<compile_context>
chip_gen: v5e
topology: v5e:2x2
jax: 0.10.0
libtpu: 0.0.40
codegen_flags: <defaults>
</compile_context>

<pallas_src>
import functools

import jax
import jax.numpy as jnp
from jax.experimental import pallas as pl
from jax.experimental.pallas import tpu as pltpu


# ----------------------------------------------------------------------------
# Single fused kernel: embedding gather -> LSTM (T steps) -> output projection.
# ----------------------------------------------------------------------------
def _decoder_kernel(idx_ref,                 # SMEM (B, T) int32  (scalar prefetch)
                    emb_ref,                 # VMEM (V, E)
                    h0_ref, c0_ref,          # VMEM (1, B, H)
                    wih_ref,                 # VMEM (E, 4H)
                    whh_ref,                 # VMEM (H, 4H)
                    b_ref,                   # VMEM (1, 4H)
                    wout_ref,                # VMEM (H, Vp)
                    bout_ref,                # VMEM (1, Vp)
                    out_ref,                 # VMEM (B*T, Vp)
                    x_sc,                    # VMEM (T*B, E) scratch
                    hid_sc,                  # VMEM (B*T, H) scratch
                    *, B, T, H):
    # 1) Fused embedding gather (time-major rows: row = t*B + b).
    for t in range(T):
        for b in range(B):
            r = t * B + b
            x_sc[r:r + 1, :] = emb_ref[pl.ds(idx_ref[b, t], 1), :]

    # 2) Input projection for all T*B rows at once, bias folded in once
    #    (hoisted out of the recurrence).  4H = 128 -> single lane-dense
    #    MXU call.
    xproj = (jnp.dot(x_sc[...], wih_ref[...],
                     preferred_element_type=jnp.float32)
             + b_ref[...])                                       # (T*B, 4H)

    # 3) Statically unrolled recurrence over vreg-resident (h, c); the only
    #    per-step MXU work is one small fused (B, H) @ (H, 4H) matmul.
    h = h0_ref[0]                                                # (B, H)
    c = c0_ref[0]                                                # (B, H)
    whh = whh_ref[...]                                           # (H, 4H)
    for t in range(T):
        gates = xproj[t * B:(t + 1) * B, :] + jnp.dot(
            h, whh, preferred_element_type=jnp.float32)          # (B, 4H)
        # PyTorch LSTM gate order: i, f, g, o
        i_g = jax.nn.sigmoid(gates[:, 0 * H:1 * H])
        f_g = jax.nn.sigmoid(gates[:, 1 * H:2 * H])
        g_g = jnp.tanh(gates[:, 2 * H:3 * H])
        o_g = jax.nn.sigmoid(gates[:, 3 * H:4 * H])
        c = f_g * c + i_g * g_g
        h = o_g * jnp.tanh(c)
        # Store hidden states batch-major so the final logits come out in
        # (B, T, Vp) order with no post-kernel transpose.
        for b in range(B):
            hid_sc[b * T + t:b * T + t + 1, :] = h[b:b + 1, :]

    # 4) Fused output projection; Vp is a multiple of 128 -> one lane-dense
    #    (B*T, Vp) store.
    out_ref[...] = (jnp.dot(hid_sc[...], wout_ref[...],
                            preferred_element_type=jnp.float32)
                    + bout_ref[...])


def _decoder_pallas(decoder_inputs, emb, h0, c0, w_ih, w_hh, bias, w_out, b_out):
    """decoder_inputs: (B,T) int32; emb: (V,E); h0/c0: (1,B,H);
    w_ih: (E,4H); w_hh: (H,4H); bias: (1,4H); w_out: (H,Vp); b_out: (1,Vp)."""
    B, T = decoder_inputs.shape
    _, E = emb.shape
    H = h0.shape[-1]
    Vp = w_out.shape[-1]
    kernel = functools.partial(_decoder_kernel, B=B, T=T, H=H)
    grid_spec = pltpu.PrefetchScalarGridSpec(
        num_scalar_prefetch=1,
        grid=(1,),
        in_specs=[
            pl.BlockSpec(emb.shape, lambda i, idx: (0, 0)),
            pl.BlockSpec(h0.shape, lambda i, idx: (0, 0, 0)),
            pl.BlockSpec(c0.shape, lambda i, idx: (0, 0, 0)),
            pl.BlockSpec(w_ih.shape, lambda i, idx: (0, 0)),
            pl.BlockSpec(w_hh.shape, lambda i, idx: (0, 0)),
            pl.BlockSpec(bias.shape, lambda i, idx: (0, 0)),
            pl.BlockSpec(w_out.shape, lambda i, idx: (0, 0)),
            pl.BlockSpec(b_out.shape, lambda i, idx: (0, 0)),
        ],
        out_specs=pl.BlockSpec((B * T, Vp), lambda i, idx: (0, 0)),
        scratch_shapes=[pltpu.VMEM((T * B, E), jnp.float32),
                        pltpu.VMEM((B * T, H), jnp.float32)],
    )
    return pl.pallas_call(
        kernel,
        out_shape=jax.ShapeDtypeStruct((B * T, Vp), jnp.float32),
        grid_spec=grid_spec,
        compiler_params=pltpu.CompilerParams(
            dimension_semantics=("arbitrary",)),
    )(decoder_inputs, emb, h0, c0, w_ih, w_hh, bias, w_out, b_out)


# ----------------------------------------------------------------------------
# Decoder.forward
# ----------------------------------------------------------------------------
def decoder_forward(params, en_state, emo_vector, decoder_inputs,
                    decoder_lengths, decoder_targets):
    # emo_vector / decoder_lengths / decoder_targets are unused in the torch
    # forward (dec_word_emo_vec = dec_input_embed), kept for API parity.
    del emo_vector, decoder_lengths, decoder_targets
    h0_all, c0_all = en_state                                   # (L, B, H)
    assert h0_all.shape[0] == 1, "kernel implements dec_numlayer = 1"
    B, T = decoder_inputs.shape
    V = params["vocab_size"]
    logits_p = _decoder_pallas(decoder_inputs.astype(jnp.int32),
                               params["embedding"],
                               h0_all.astype(jnp.float32),
                               c0_all.astype(jnp.float32),
                               params["w_ih"], params["w_hh"], params["b"],
                               params["w_out"], params["b_out"])
    # (B*T, Vp) is already batch-major -> free reshape; slice off lane pad.
    return logits_p.reshape(B, T, -1)[:, :, :V]                  # (B, T, V)


# ----------------------------------------------------------------------------
# Pure-JAX reference built directly from the PyTorch-layout parameters.
# ----------------------------------------------------------------------------
def reference_forward(emb_table, w_ih_pt, w_hh_pt, b_ih_pt, b_hh_pt,
                      w_out_pt, b_out_pt, h0, c0, decoder_inputs):
    H = h0.shape[-1]
    emb = emb_table[decoder_inputs]                    # (B, T, E)
    x = jnp.transpose(emb, (1, 0, 2))                  # (T, B, E)

    def step(carry, xt):
        h, c = carry
        gates = xt @ w_ih_pt.T + h @ w_hh_pt.T + b_ih_pt + b_hh_pt
        i = jax.nn.sigmoid(gates[:, 0 * H:1 * H])
        f = jax.nn.sigmoid(gates[:, 1 * H:2 * H])
        g = jnp.tanh(gates[:, 2 * H:3 * H])
        o = jax.nn.sigmoid(gates[:, 3 * H:4 * H])
        c = f * c + i * g
        h = o * jnp.tanh(c)
        return (h, c), h

    (_, _), hs = jax.lax.scan(step, (h0, c0), x)        # (T, B, H)
    logits = hs @ w_out_pt.T + b_out_pt                 # (T, B, V)
    return jnp.transpose(logits, (1, 0, 2))             # (B, T, V)


# TODO(synk): generate() / generate_beam() (greedy & beam token-by-token
# decoding with Python priority queues) are host-side control flow and are not
# translated; only forward() is implemented.


if __name__ == "__main__":
    B, T, E, H, V, L = 2, 8, 16, 32, 64, 1
    VP = ((V + 127) // 128) * 128          # vocab padded to a lane-dense width

    key = jax.random.PRNGKey(0)
    ks = jax.random.split(key, 10)
    s = 1.0 / jnp.sqrt(H)

    # PyTorch-layout parameters (deterministic, synthetic).
    emb_table = jax.random.normal(ks[0], (V, E), jnp.float32) * 0.1
    w_ih_pt = jax.random.uniform(ks[1], (4 * H, E), jnp.float32, -s, s)
    w_hh_pt = jax.random.uniform(ks[2], (4 * H, H), jnp.float32, -s, s)
    b_ih_pt = jax.random.uniform(ks[3], (4 * H,), jnp.float32, -s, s)
    b_hh_pt = jax.random.uniform(ks[4], (4 * H,), jnp.float32, -s, s)
    w_out_pt = jax.random.uniform(ks[5], (V, H), jnp.float32, -s, s)
    b_out_pt = jax.random.uniform(ks[6], (V,), jnp.float32, -s, s)

    # Kernel layouts: w_ih (4H,E)->(E,4H); w_hh (4H,H)->(H,4H);
    # bias b_ih+b_hh -> (1,4H); out weight (V,H)->(H,V), zero-padded to (H,VP).
    params = {
        "embedding": emb_table,
        "w_ih": w_ih_pt.T,
        "w_hh": w_hh_pt.T,
        "b": (b_ih_pt + b_hh_pt).reshape(1, 4 * H),
        "w_out": jnp.pad(w_out_pt.T, ((0, 0), (0, VP - V))),
        "b_out": jnp.pad(b_out_pt, (0, VP - V)).reshape(1, VP),
        "vocab_size": V,
    }

    # Inputs
    decoder_inputs = jax.random.randint(ks[7], (B, T), 0, V, jnp.int32)
    decoder_lengths = jnp.full((B,), T, jnp.int32)
    decoder_targets = jax.random.randint(ks[8], (B, T), 0, V, jnp.int32)
    h0 = jax.random.normal(ks[9], (L, B, H), jnp.float32) * 0.1
    c0 = jax.random.normal(jax.random.fold_in(key, 99), (L, B, H),
                           jnp.float32) * 0.1
    en_state = (h0, c0)
    emo_vector = jnp.zeros((B, H), jnp.float32)

    out = decoder_forward(params, en_state, emo_vector, decoder_inputs,
                          decoder_lengths, decoder_targets)
    out = jax.block_until_ready(out)
    assert out.shape == (B, T, V), out.shape

    ref = jax.block_until_ready(
        reference_forward(emb_table, w_ih_pt, w_hh_pt, b_ih_pt, b_hh_pt,
                          w_out_pt, b_out_pt, h0[0], c0[0], decoder_inputs))
    max_err = float(jnp.max(jnp.abs(out - ref)))
    assert jnp.allclose(out, ref, rtol=1e-3, atol=1e-3), max_err

    print("KERNEL_OK")
</pallas_src>

<mosaic_0001>
module attributes {stable_mosaic.version = 11 : i64} {
  func.func @_decoder_kernel(%arg0: i32, %arg1: memref<2x8xi32, #tpu.memory_space<smem>>, %arg2: memref<64x16xf32, #tpu.memory_space<vmem>>, %arg3: memref<1x2x32xf32, #tpu.memory_space<vmem>>, %arg4: memref<1x2x32xf32, #tpu.memory_space<vmem>>, %arg5: memref<16x128xf32, #tpu.memory_space<vmem>>, %arg6: memref<32x128xf32, #tpu.memory_space<vmem>>, %arg7: memref<1x128xf32, #tpu.memory_space<vmem>>, %arg8: memref<32x128xf32, #tpu.memory_space<vmem>>, %arg9: memref<1x128xf32, #tpu.memory_space<vmem>>, %arg10: memref<16x128xf32, #tpu.memory_space<vmem>>, %arg11: memref<16x16xf32, #tpu.memory_space<vmem>>, %arg12: memref<16x32xf32, #tpu.memory_space<vmem>>) attributes {dimension_semantics = [#tpu.dimension_semantics<arbitrary>], iteration_bounds = array<i64: 1>, scalar_prefetch = 1 : i64, scratch_operands = 2 : i64, tpu.core_type = #tpu.core_type<tc>, window_params = [{pipeline_mode = #tpu.pipeline_mode<synchronous>, transform_indices = @transform_0, window_bounds = array<i64: 64, 16>}, {pipeline_mode = #tpu.pipeline_mode<synchronous>, transform_indices = @transform_1, window_bounds = array<i64: 1, 2, 32>}, {pipeline_mode = #tpu.pipeline_mode<synchronous>, transform_indices = @transform_2, window_bounds = array<i64: 1, 2, 32>}, {pipeline_mode = #tpu.pipeline_mode<synchronous>, transform_indices = @transform_3, window_bounds = array<i64: 16, 128>}, {pipeline_mode = #tpu.pipeline_mode<synchronous>, transform_indices = @transform_4, window_bounds = array<i64: 32, 128>}, {pipeline_mode = #tpu.pipeline_mode<synchronous>, transform_indices = @transform_5, window_bounds = array<i64: 1, 128>}, {pipeline_mode = #tpu.pipeline_mode<synchronous>, transform_indices = @transform_6, window_bounds = array<i64: 32, 128>}, {pipeline_mode = #tpu.pipeline_mode<synchronous>, transform_indices = @transform_7, window_bounds = array<i64: 1, 128>}, {pipeline_mode = #tpu.pipeline_mode<synchronous>, transform_indices = @transform_8, window_bounds = array<i64: 16, 128>}]} {
    %c0 = arith.constant 0 : index
    %c0_0 = arith.constant 0 : index
    %0 = memref.load %arg1[%c0, %c0_0] : memref<2x8xi32, #tpu.memory_space<smem>>
    %1 = arith.index_cast %0 : i32 to index
    %c0_1 = arith.constant 0 : index
    %2 = vector.load %arg2[%1, %c0_1] : memref<64x16xf32, #tpu.memory_space<vmem>>, vector<1x16xf32>
    %c0_2 = arith.constant 0 : index
    %c0_3 = arith.constant 0 : index
    %3 = vector.load %arg11[%c0_2, %c0_3] : memref<16x16xf32, #tpu.memory_space<vmem>>, vector<1x16xf32>
    tpu.vector_store %arg11[%c0_2, %c0_3], %2 {strides = array<i32>} : memref<16x16xf32, #tpu.memory_space<vmem>>, vector<1x16xf32>,
    %c1 = arith.constant 1 : index
    %c0_4 = arith.constant 0 : index
    %4 = memref.load %arg1[%c1, %c0_4] : memref<2x8xi32, #tpu.memory_space<smem>>
    %5 = arith.index_cast %4 : i32 to index
    %c0_5 = arith.constant 0 : index
    %6 = vector.load %arg2[%5, %c0_5] : memref<64x16xf32, #tpu.memory_space<vmem>>, vector<1x16xf32>
    %c1_6 = arith.constant 1 : index
    %c0_7 = arith.constant 0 : index
    %7 = vector.load %arg11[%c1_6, %c0_7] : memref<16x16xf32, #tpu.memory_space<vmem>>, vector<1x16xf32>
    tpu.vector_store %arg11[%c1_6, %c0_7], %6 {strides = array<i32>} : memref<16x16xf32, #tpu.memory_space<vmem>>, vector<1x16xf32>,
    %c0_8 = arith.constant 0 : index
    %c1_9 = arith.constant 1 : index
    %8 = memref.load %arg1[%c0_8, %c1_9] : memref<2x8xi32, #tpu.memory_space<smem>>
    %9 = arith.index_cast %8 : i32 to index
    %c0_10 = arith.constant 0 : index
    %10 = vector.load %arg2[%9, %c0_10] : memref<64x16xf32, #tpu.memory_space<vmem>>, vector<1x16xf32>
    %c2 = arith.constant 2 : index
    %c0_11 = arith.constant 0 : index
    %11 = vector.load %arg11[%c2, %c0_11] : memref<16x16xf32, #tpu.memory_space<vmem>>, vector<1x16xf32>
    tpu.vector_store %arg11[%c2, %c0_11], %10 {strides = array<i32>} : memref<16x16xf32, #tpu.memory_space<vmem>>, vector<1x16xf32>,
    %c1_12 = arith.constant 1 : index
    %c1_13 = arith.constant 1 : index
    %12 = memref.load %arg1[%c1_12, %c1_13] : memref<2x8xi32, #tpu.memory_space<smem>>
    %13 = arith.index_cast %12 : i32 to index
    %c0_14 = arith.constant 0 : index
    %14 = vector.load %arg2[%13, %c0_14] : memref<64x16xf32, #tpu.memory_space<vmem>>, vector<1x16xf32>
    %c3 = arith.constant 3 : index
    %c0_15 = arith.constant 0 : index
    %15 = vector.load %arg11[%c3, %c0_15] : memref<16x16xf32, #tpu.memory_space<vmem>>, vector<1x16xf32>
    tpu.vector_store %arg11[%c3, %c0_15], %14 {strides = array<i32>} : memref<16x16xf32, #tpu.memory_space<vmem>>, vector<1x16xf32>,
    %c0_16 = arith.constant 0 : index
    %c2_17 = arith.constant 2 : index
    %16 = memref.load %arg1[%c0_16, %c2_17] : memref<2x8xi32, #tpu.memory_space<smem>>
    %17 = arith.index_cast %16 : i32 to index
    %c0_18 = arith.constant 0 : index
    %18 = vector.load %arg2[%17, %c0_18] : memref<64x16xf32, #tpu.memory_space<vmem>>, vector<1x16xf32>
    %c4 = arith.constant 4 : index
    %c0_19 = arith.constant 0 : index
    %19 = vector.load %arg11[%c4, %c0_19] : memref<16x16xf32, #tpu.memory_space<vmem>>, vector<1x16xf32>
    tpu.vector_store %arg11[%c4, %c0_19], %18 {strides = array<i32>} : memref<16x16xf32, #tpu.memory_space<vmem>>, vector<1x16xf32>,
    %c1_20 = arith.constant 1 : index
    %c2_21 = arith.constant 2 : index
    %20 = memref.load %arg1[%c1_20, %c2_21] : memref<2x8xi32, #tpu.memory_space<smem>>
    %21 = arith.index_cast %20 : i32 to index
    %c0_22 = arith.constant 0 : index
    %22 = vector.load %arg2[%21, %c0_22] : memref<64x16xf32, #tpu.memory_space<vmem>>, vector<1x16xf32>
    %c5 = arith.constant 5 : index
    %c0_23 = arith.constant 0 : index
    %23 = vector.load %arg11[%c5, %c0_23] : memref<16x16xf32, #tpu.memory_space<vmem>>, vector<1x16xf32>
    tpu.vector_store %arg11[%c5, %c0_23], %22 {strides = array<i32>} : memref<16x16xf32, #tpu.memory_space<vmem>>, vector<1x16xf32>,
    %c0_24 = arith.constant 0 : index
    %c3_25 = arith.constant 3 : index
    %24 = memref.load %arg1[%c0_24, %c3_25] : memref<2x8xi32, #tpu.memory_space<smem>>
    %25 = arith.index_cast %24 : i32 to index
    %c0_26 = arith.constant 0 : index
    %26 = vector.load %arg2[%25, %c0_26] : memref<64x16xf32, #tpu.memory_space<vmem>>, vector<1x16xf32>
    %c6 = arith.constant 6 : index
    %c0_27 = arith.constant 0 : index
    %27 = vector.load %arg11[%c6, %c0_27] : memref<16x16xf32, #tpu.memory_space<vmem>>, vector<1x16xf32>
    tpu.vector_store %arg11[%c6, %c0_27], %26 {strides = array<i32>} : memref<16x16xf32, #tpu.memory_space<vmem>>, vector<1x16xf32>,
    %c1_28 = arith.constant 1 : index
    %c3_29 = arith.constant 3 : index
    %28 = memref.load %arg1[%c1_28, %c3_29] : memref<2x8xi32, #tpu.memory_space<smem>>
    %29 = arith.index_cast %28 : i32 to index
    %c0_30 = arith.constant 0 : index
    %30 = vector.load %arg2[%29, %c0_30] : memref<64x16xf32, #tpu.memory_space<vmem>>, vector<1x16xf32>
    %c7 = arith.constant 7 : index
    %c0_31 = arith.constant 0 : index
    %31 = vector.load %arg11[%c7, %c0_31] : memref<16x16xf32, #tpu.memory_space<vmem>>, vector<1x16xf32>
    tpu.vector_store %arg11[%c7, %c0_31], %30 {strides = array<i32>} : memref<16x16xf32, #tpu.memory_space<vmem>>, vector<1x16xf32>,
    %c0_32 = arith.constant 0 : index
    %c4_33 = arith.constant 4 : index
    %32 = memref.load %arg1[%c0_32, %c4_33] : memref<2x8xi32, #tpu.memory_space<smem>>
    %33 = arith.index_cast %32 : i32 to index
    %c0_34 = arith.constant 0 : index
    %34 = vector.load %arg2[%33, %c0_34] : memref<64x16xf32, #tpu.memory_space<vmem>>, vector<1x16xf32>
    %c8 = arith.constant 8 : index
    %c0_35 = arith.constant 0 : index
    %35 = vector.load %arg11[%c8, %c0_35] : memref<16x16xf32, #tpu.memory_space<vmem>>, vector<1x16xf32>
    tpu.vector_store %arg11[%c8, %c0_35], %34 {strides = array<i32>} : memref<16x16xf32, #tpu.memory_space<vmem>>, vector<1x16xf32>,
    %c1_36 = arith.constant 1 : index
    %c4_37 = arith.constant 4 : index
    %36 = memref.load %arg1[%c1_36, %c4_37] : memref<2x8xi32, #tpu.memory_space<smem>>
    %37 = arith.index_cast %36 : i32 to index
    %c0_38 = arith.constant 0 : index
    %38 = vector.load %arg2[%37, %c0_38] : memref<64x16xf32, #tpu.memory_space<vmem>>, vector<1x16xf32>
    %c9 = arith.constant 9 : index
    %c0_39 = arith.constant 0 : index
    %39 = vector.load %arg11[%c9, %c0_39] : memref<16x16xf32, #tpu.memory_space<vmem>>, vector<1x16xf32>
    tpu.vector_store %arg11[%c9, %c0_39], %38 {strides = array<i32>} : memref<16x16xf32, #tpu.memory_space<vmem>>, vector<1x16xf32>,
    %c0_40 = arith.constant 0 : index
    %c5_41 = arith.constant 5 : index
    %40 = memref.load %arg1[%c0_40, %c5_41] : memref<2x8xi32, #tpu.memory_space<smem>>
    %41 = arith.index_cast %40 : i32 to index
    %c0_42 = arith.constant 0 : index
    %42 = vector.load %arg2[%41, %c0_42] : memref<64x16xf32, #tpu.memory_space<vmem>>, vector<1x16xf32>
    %c10 = arith.constant 10 : index
    %c0_43 = arith.constant 0 : index
    %43 = vector.load %arg11[%c10, %c0_43] : memref<16x16xf32, #tpu.memory_space<vmem>>, vector<1x16xf32>
    tpu.vector_store %arg11[%c10, %c0_43], %42 {strides = array<i32>} : memref<16x16xf32, #tpu.memory_space<vmem>>, vector<1x16xf32>,
    %c1_44 = arith.constant 1 : index
    %c5_45 = arith.constant 5 : index
    %44 = memref.load %arg1[%c1_44, %c5_45] : memref<2x8xi32, #tpu.memory_space<smem>>
    %45 = arith.index_cast %44 : i32 to index
    %c0_46 = arith.constant 0 : index
    %46 = vector.load %arg2[%45, %c0_46] : memref<64x16xf32, #tpu.memory_space<vmem>>, vector<1x16xf32>
    %c11 = arith.constant 11 : index
    %c0_47 = arith.constant 0 : index
    %47 = vector.load %arg11[%c11, %c0_47] : memref<16x16xf32, #tpu.memory_space<vmem>>, vector<1x16xf32>
    tpu.vector_store %arg11[%c11, %c0_47], %46 {strides = array<i32>} : memref<16x16xf32, #tpu.memory_space<vmem>>, vector<1x16xf32>,
    %c0_48 = arith.constant 0 : index
    %c6_49 = arith.constant 6 : index
    %48 = memref.load %arg1[%c0_48, %c6_49] : memref<2x8xi32, #tpu.memory_space<smem>>
    %49 = arith.index_cast %48 : i32 to index
    %c0_50 = arith.constant 0 : index
    %50 = vector.load %arg2[%49, %c0_50] : memref<64x16xf32, #tpu.memory_space<vmem>>, vector<1x16xf32>
    %c12 = arith.constant 12 : index
    %c0_51 = arith.constant 0 : index
    %51 = vector.load %arg11[%c12, %c0_51] : memref<16x16xf32, #tpu.memory_space<vmem>>, vector<1x16xf32>
    tpu.vector_store %arg11[%c12, %c0_51], %50 {strides = array<i32>} : memref<16x16xf32, #tpu.memory_space<vmem>>, vector<1x16xf32>,
    %c1_52 = arith.constant 1 : index
    %c6_53 = arith.constant 6 : index
    %52 = memref.load %arg1[%c1_52, %c6_53] : memref<2x8xi32, #tpu.memory_space<smem>>
    %53 = arith.index_cast %52 : i32 to index
    %c0_54 = arith.constant 0 : index
    %54 = vector.load %arg2[%53, %c0_54] : memref<64x16xf32, #tpu.memory_space<vmem>>, vector<1x16xf32>
    %c13 = arith.constant 13 : index
    %c0_55 = arith.constant 0 : index
    %55 = vector.load %arg11[%c13, %c0_55] : memref<16x16xf32, #tpu.memory_space<vmem>>, vector<1x16xf32>
    tpu.vector_store %arg11[%c13, %c0_55], %54 {strides = array<i32>} : memref<16x16xf32, #tpu.memory_space<vmem>>, vector<1x16xf32>,
    %c0_56 = arith.constant 0 : index
    %c7_57 = arith.constant 7 : index
    %56 = memref.load %arg1[%c0_56, %c7_57] : memref<2x8xi32, #tpu.memory_space<smem>>
    %57 = arith.index_cast %56 : i32 to index
    %c0_58 = arith.constant 0 : index
    %58 = vector.load %arg2[%57, %c0_58] : memref<64x16xf32, #tpu.memory_space<vmem>>, vector<1x16xf32>
    %c14 = arith.constant 14 : index
    %c0_59 = arith.constant 0 : index
    %59 = vector.load %arg11[%c14, %c0_59] : memref<16x16xf32, #tpu.memory_space<vmem>>, vector<1x16xf32>
    tpu.vector_store %arg11[%c14, %c0_59], %58 {strides = array<i32>} : memref<16x16xf32, #tpu.memory_space<vmem>>, vector<1x16xf32>,
    %c1_60 = arith.constant 1 : index
    %c7_61 = arith.constant 7 : index
    %60 = memref.load %arg1[%c1_60, %c7_61] : memref<2x8xi32, #tpu.memory_space<smem>>
    %61 = arith.index_cast %60 : i32 to index
    %c0_62 = arith.constant 0 : index
    %62 = vector.load %arg2[%61, %c0_62] : memref<64x16xf32, #tpu.memory_space<vmem>>, vector<1x16xf32>
    %c15 = arith.constant 15 : index
    %c0_63 = arith.constant 0 : index
    %63 = vector.load %arg11[%c15, %c0_63] : memref<16x16xf32, #tpu.memory_space<vmem>>, vector<1x16xf32>
    tpu.vector_store %arg11[%c15, %c0_63], %62 {strides = array<i32>} : memref<16x16xf32, #tpu.memory_space<vmem>>, vector<1x16xf32>,
    %c0_64 = arith.constant 0 : index
    %c0_65 = arith.constant 0 : index
    %64 = vector.load %arg11[%c0_64, %c0_65] : memref<16x16xf32, #tpu.memory_space<vmem>>, vector<16x16xf32>
    %c0_66 = arith.constant 0 : index
    %c0_67 = arith.constant 0 : index
    %65 = vector.load %arg5[%c0_66, %c0_67] : memref<16x128xf32, #tpu.memory_space<vmem>>, vector<16x128xf32>
    %cst = arith.constant dense<0.000000e+00> : vector<16x128xf32>
    %66 = tpu.matmul %64, %65, %cst {dimension_numbers = #tpu.dot_dimension_numbers<[1], [0], [0], [1], [0, 0, 1, 1], [], []>} : vector<16x16xf32>, vector<16x128xf32>, vector<16x128xf32> -> vector<16x128xf32>
    %c0_68 = arith.constant 0 : index
    %c0_69 = arith.constant 0 : index
    %67 = vector.load %arg7[%c0_68, %c0_69] : memref<1x128xf32, #tpu.memory_space<vmem>>, vector<1x128xf32>
    %68 = vector.broadcast %67 : vector<1x128xf32> to vector<16x128xf32>
    %69 = arith.addf %66, %68 : vector<16x128xf32>
    %c0_70 = arith.constant 0 : index
    %c0_71 = arith.constant 0 : index
    %c0_72 = arith.constant 0 : index
    %70 = vector.load %arg3[%c0_70, %c0_71, %c0_72] : memref<1x2x32xf32, #tpu.memory_space<vmem>>, vector<1x2x32xf32>
    %71 = vector.shape_cast %70 : vector<1x2x32xf32> to vector<2x32xf32>
    %c0_73 = arith.constant 0 : index
    %c0_74 = arith.constant 0 : index
    %c0_75 = arith.constant 0 : index
    %72 = vector.load %arg4[%c0_73, %c0_74, %c0_75] : memref<1x2x32xf32, #tpu.memory_space<vmem>>, vector<1x2x32xf32>
    %73 = vector.shape_cast %72 : vector<1x2x32xf32> to vector<2x32xf32>
    %c0_76 = arith.constant 0 : index
    %c0_77 = arith.constant 0 : index
    %74 = vector.load %arg6[%c0_76, %c0_77] : memref<32x128xf32, #tpu.memory_space<vmem>>, vector<32x128xf32>
    %75 = vector.extract_strided_slice %69 {offsets = [0, 0], sizes = [2, 128], strides = [1, 1]} : vector<16x128xf32> to vector<2x128xf32>
    %cst_78 = arith.constant dense<0.000000e+00> : vector<2x128xf32>
    %76 = tpu.matmul %71, %74, %cst_78 {dimension_numbers = #tpu.dot_dimension_numbers<[1], [0], [0], [1], [0, 0, 1, 1], [], []>} : vector<2x32xf32>, vector<32x128xf32>, vector<2x128xf32> -> vector<2x128xf32>
    %77 = arith.addf %75, %76 : vector<2x128xf32>
    %78 = vector.extract_strided_slice %77 {offsets = [0, 0], sizes = [2, 32], strides = [1, 1]} : vector<2x128xf32> to vector<2x32xf32>
    %79 = arith.negf %78 : vector<2x32xf32>
    %80 = math.exp %79 : vector<2x32xf32>
    %cst_79 = arith.constant 1.000000e+00 : f32
    %81 = vector.broadcast %cst_79 : f32 to vector<2x32xf32>
    %82 = arith.addf %81, %80 : vector<2x32xf32>
    %83 = arith.divf %81, %82 : vector<2x32xf32>
    %84 = vector.extract_strided_slice %77 {offsets = [0, 32], sizes = [2, 32], strides = [1, 1]} : vector<2x128xf32> to vector<2x32xf32>
    %85 = arith.negf %84 : vector<2x32xf32>
    %86 = math.exp %85 : vector<2x32xf32>
    %cst_80 = arith.constant 1.000000e+00 : f32
    %87 = vector.broadcast %cst_80 : f32 to vector<2x32xf32>
    %88 = arith.addf %87, %86 : vector<2x32xf32>
    %89 = arith.divf %87, %88 : vector<2x32xf32>
    %90 = vector.extract_strided_slice %77 {offsets = [0, 64], sizes = [2, 32], strides = [1, 1]} : vector<2x128xf32> to vector<2x32xf32>
    %91 = math.tanh %90 : vector<2x32xf32>
    %92 = vector.extract_strided_slice %77 {offsets = [0, 96], sizes = [2, 32], strides = [1, 1]} : vector<2x128xf32> to vector<2x32xf32>
    %93 = arith.negf %92 : vector<2x32xf32>
    %94 = math.exp %93 : vector<2x32xf32>
    %cst_81 = arith.constant 1.000000e+00 : f32
    %95 = vector.broadcast %cst_81 : f32 to vector<2x32xf32>
    %96 = arith.addf %95, %94 : vector<2x32xf32>
    %97 = arith.divf %95, %96 : vector<2x32xf32>
    %98 = arith.mulf %89, %73 : vector<2x32xf32>
    %99 = arith.mulf %83, %91 : vector<2x32xf32>
    %100 = arith.addf %98, %99 : vector<2x32xf32>
    %101 = math.tanh %100 : vector<2x32xf32>
    %102 = arith.mulf %97, %101 : vector<2x32xf32>
    %103 = vector.extract_strided_slice %102 {offsets = [0, 0], sizes = [1, 32], strides = [1, 1]} : vector<2x32xf32> to vector<1x32xf32>
    %c0_82 = arith.constant 0 : index
    %c0_83 = arith.constant 0 : index
    %104 = vector.load %arg12[%c0_82, %c0_83] : memref<16x32xf32, #tpu.memory_space<vmem>>, vector<1x32xf32>
    tpu.vector_store %arg12[%c0_82, %c0_83], %103 {strides = array<i32>} : memref<16x32xf32, #tpu.memory_space<vmem>>, vector<1x32xf32>,
    %105 = vector.extract_strided_slice %102 {offsets = [1, 0], sizes = [1, 32], strides = [1, 1]} : vector<2x32xf32> to vector<1x32xf32>
    %c8_84 = arith.constant 8 : index
    %c0_85 = arith.constant 0 : index
    %106 = vector.load %arg12[%c8_84, %c0_85] : memref<16x32xf32, #tpu.memory_space<vmem>>, vector<1x32xf32>
    tpu.vector_store %arg12[%c8_84, %c0_85], %105 {strides = array<i32>} : memref<16x32xf32, #tpu.memory_space<vmem>>, vector<1x32xf32>,
    %107 = vector.extract_strided_slice %69 {offsets = [2, 0], sizes = [2, 128], strides = [1, 1]} : vector<16x128xf32> to vector<2x128xf32>
    %cst_86 = arith.constant dense<0.000000e+00> : vector<2x128xf32>
    %108 = tpu.matmul %102, %74, %cst_86 {dimension_numbers = #tpu.dot_dimension_numbers<[1], [0], [0], [1], [0, 0, 1, 1], [], []>} : vector<2x32xf32>, vector<32x128xf32>, vector<2x128xf32> -> vector<2x128xf32>
    %109 = arith.addf %107, %108 : vector<2x128xf32>
    %110 = vector.extract_strided_slice %109 {offsets = [0, 0], sizes = [2, 32], strides = [1, 1]} : vector<2x128xf32> to vector<2x32xf32>
    %111 = arith.negf %110 : vector<2x32xf32>
    %112 = math.exp %111 : vector<2x32xf32>
    %cst_87 = arith.constant 1.000000e+00 : f32
    %113 = vector.broadcast %cst_87 : f32 to vector<2x32xf32>
    %114 = arith.addf %113, %112 : vector<2x32xf32>
    %115 = arith.divf %113, %114 : vector<2x32xf32>
    %116 = vector.extract_strided_slice %109 {offsets = [0, 32], sizes = [2, 32], strides = [1, 1]} : vector<2x128xf32> to vector<2x32xf32>
    %117 = arith.negf %116 : vector<2x32xf32>
    %118 = math.exp %117 : vector<2x32xf32>
    %cst_88 = arith.constant 1.000000e+00 : f32
    %119 = vector.broadcast %cst_88 : f32 to vector<2x32xf32>
    %120 = arith.addf %119, %118 : vector<2x32xf32>
    %121 = arith.divf %119, %120 : vector<2x32xf32>
    %122 = vector.extract_strided_slice %109 {offsets = [0, 64], sizes = [2, 32], strides = [1, 1]} : vector<2x128xf32> to vector<2x32xf32>
    %123 = math.tanh %122 : vector<2x32xf32>
    %124 = vector.extract_strided_slice %109 {offsets = [0, 96], sizes = [2, 32], strides = [1, 1]} : vector<2x128xf32> to vector<2x32xf32>
    %125 = arith.negf %124 : vector<2x32xf32>
    %126 = math.exp %125 : vector<2x32xf32>
    %cst_89 = arith.constant 1.000000e+00 : f32
    %127 = vector.broadcast %cst_89 : f32 to vector<2x32xf32>
    %128 = arith.addf %127, %126 : vector<2x32xf32>
    %129 = arith.divf %127, %128 : vector<2x32xf32>
    %130 = arith.mulf %121, %100 : vector<2x32xf32>
    %131 = arith.mulf %115, %123 : vector<2x32xf32>
    %132 = arith.addf %130, %131 : vector<2x32xf32>
    %133 = math.tanh %132 : vector<2x32xf32>
    %134 = arith.mulf %129, %133 : vector<2x32xf32>
    %135 = vector.extract_strided_slice %134 {offsets = [0, 0], sizes = [1, 32], strides = [1, 1]} : vector<2x32xf32> to vector<1x32xf32>
    %c1_90 = arith.constant 1 : index
    %c0_91 = arith.constant 0 : index
    %136 = vector.load %arg12[%c1_90, %c0_91] : memref<16x32xf32, #tpu.memory_space<vmem>>, vector<1x32xf32>
    tpu.vector_store %arg12[%c1_90, %c0_91], %135 {strides = array<i32>} : memref<16x32xf32, #tpu.memory_space<vmem>>, vector<1x32xf32>,
    %137 = vector.extract_strided_slice %134 {offsets = [1, 0], sizes = [1, 32], strides = [1, 1]} : vector<2x32xf32> to vector<1x32xf32>
    %c9_92 = arith.constant 9 : index
    %c0_93 = arith.constant 0 : index
    %138 = vector.load %arg12[%c9_92, %c0_93] : memref<16x32xf32, #tpu.memory_space<vmem>>, vector<1x32xf32>
    tpu.vector_store %arg12[%c9_92, %c0_93], %137 {strides = array<i32>} : memref<16x32xf32, #tpu.memory_space<vmem>>, vector<1x32xf32>,
    %139 = vector.extract_strided_slice %69 {offsets = [4, 0], sizes = [2, 128], strides = [1, 1]} : vector<16x128xf32> to vector<2x128xf32>
    %cst_94 = arith.constant dense<0.000000e+00> : vector<2x128xf32>
    %140 = tpu.matmul %134, %74, %cst_94 {dimension_numbers = #tpu.dot_dimension_numbers<[1], [0], [0], [1], [0, 0, 1, 1], [], []>} : vector<2x32xf32>, vector<32x128xf32>, vector<2x128xf32> -> vector<2x128xf32>
    %141 = arith.addf %139, %140 : vector<2x128xf32>
    %142 = vector.extract_strided_slice %141 {offsets = [0, 0], sizes = [2, 32], strides = [1, 1]} : vector<2x128xf32> to vector<2x32xf32>
    %143 = arith.negf %142 : vector<2x32xf32>
    %144 = math.exp %143 : vector<2x32xf32>
    %cst_95 = arith.constant 1.000000e+00 : f32
    %145 = vector.broadcast %cst_95 : f32 to vector<2x32xf32>
    %146 = arith.addf %145, %144 : vector<2x32xf32>
    %147 = arith.divf %145, %146 : vector<2x32xf32>
    %148 = vector.extract_strided_slice %141 {offsets = [0, 32], sizes = [2, 32], strides = [1, 1]} : vector<2x128xf32> to vector<2x32xf32>
    %149 = arith.negf %148 : vector<2x32xf32>
    %150 = math.exp %149 : vector<2x32xf32>
    %cst_96 = arith.constant 1.000000e+00 : f32
    %151 = vector.broadcast %cst_96 : f32 to vector<2x32xf32>
    %152 = arith.addf %151, %150 : vector<2x32xf32>
    %153 = arith.divf %151, %152 : vector<2x32xf32>
    %154 = vector.extract_strided_slice %141 {offsets = [0, 64], sizes = [2, 32], strides = [1, 1]} : vector<2x128xf32> to vector<2x32xf32>
    %155 = math.tanh %154 : vector<2x32xf32>
    %156 = vector.extract_strided_slice %141 {offsets = [0, 96], sizes = [2, 32], strides = [1, 1]} : vector<2x128xf32> to vector<2x32xf32>
    %157 = arith.negf %156 : vector<2x32xf32>
    %158 = math.exp %157 : vector<2x32xf32>
    %cst_97 = arith.constant 1.000000e+00 : f32
    %159 = vector.broadcast %cst_97 : f32 to vector<2x32xf32>
    %160 = arith.addf %159, %158 : vector<2x32xf32>
    %161 = arith.divf %159, %160 : vector<2x32xf32>
    %162 = arith.mulf %153, %132 : vector<2x32xf32>
    %163 = arith.mulf %147, %155 : vector<2x32xf32>
    %164 = arith.addf %162, %163 : vector<2x32xf32>
    %165 = math.tanh %164 : vector<2x32xf32>
    %166 = arith.mulf %161, %165 : vector<2x32xf32>
    %167 = vector.extract_strided_slice %166 {offsets = [0, 0], sizes = [1, 32], strides = [1, 1]} : vector<2x32xf32> to vector<1x32xf32>
    %c2_98 = arith.constant 2 : index
    %c0_99 = arith.constant 0 : index
    %168 = vector.load %arg12[%c2_98, %c0_99] : memref<16x32xf32, #tpu.memory_space<vmem>>, vector<1x32xf32>
    tpu.vector_store %arg12[%c2_98, %c0_99], %167 {strides = array<i32>} : memref<16x32xf32, #tpu.memory_space<vmem>>, vector<1x32xf32>,
    %169 = vector.extract_strided_slice %166 {offsets = [1, 0], sizes = [1, 32], strides = [1, 1]} : vector<2x32xf32> to vector<1x32xf32>
    %c10_100 = arith.constant 10 : index
    %c0_101 = arith.constant 0 : index
    %170 = vector.load %arg12[%c10_100, %c0_101] : memref<16x32xf32, #tpu.memory_space<vmem>>, vector<1x32xf32>
    tpu.vector_store %arg12[%c10_100, %c0_101], %169 {strides = array<i32>} : memref<16x32xf32, #tpu.memory_space<vmem>>, vector<1x32xf32>,
    %171 = vector.extract_strided_slice %69 {offsets = [6, 0], sizes = [2, 128], strides = [1, 1]} : vector<16x128xf32> to vector<2x128xf32>
    %cst_102 = arith.constant dense<0.000000e+00> : vector<2x128xf32>
    %172 = tpu.matmul %166, %74, %cst_102 {dimension_numbers = #tpu.dot_dimension_numbers<[1], [0], [0], [1], [0, 0, 1, 1], [], []>} : vector<2x32xf32>, vector<32x128xf32>, vector<2x128xf32> -> vector<2x128xf32>
    %173 = arith.addf %171, %172 : vector<2x128xf32>
    %174 = vector.extract_strided_slice %173 {offsets = [0, 0], sizes = [2, 32], strides = [1, 1]} : vector<2x128xf32> to vector<2x32xf32>
    %175 = arith.negf %174 : vector<2x32xf32>
    %176 = math.exp %175 : vector<2x32xf32>
    %cst_103 = arith.constant 1.000000e+00 : f32
    %177 = vector.broadcast %cst_103 : f32 to vector<2x32xf32>
    %178 = arith.addf %177, %176 : vector<2x32xf32>
    %179 = arith.divf %177, %178 : vector<2x32xf32>
    %180 = vector.extract_strided_slice %173 {offsets = [0, 32], sizes = [2, 32], strides = [1, 1]} : vector<2x128xf32> to vector<2x32xf32>
    %181 = arith.negf %180 : vector<2x32xf32>
    %182 = math.exp %181 : vector<2x32xf32>
    %cst_104 = arith.constant 1.000000e+00 : f32
    %183 = vector.broadcast %cst_104 : f32 to vector<2x32xf32>
    %184 = arith.addf %183, %182 : vector<2x32xf32>
    %185 = arith.divf %183, %184 : vector<2x32xf32>
    %186 = vector.extract_strided_slice %173 {offsets = [0, 64], sizes = [2, 32], strides = [1, 1]} : vector<2x128xf32> to vector<2x32xf32>
    %187 = math.tanh %186 : vector<2x32xf32>
    %188 = vector.extract_strided_slice %173 {offsets = [0, 96], sizes = [2, 32], strides = [1, 1]} : vector<2x128xf32> to vector<2x32xf32>
    %189 = arith.negf %188 : vector<2x32xf32>
    %190 = math.exp %189 : vector<2x32xf32>
    %cst_105 = arith.constant 1.000000e+00 : f32
    %191 = vector.broadcast %cst_105 : f32 to vector<2x32xf32>
    %192 = arith.addf %191, %190 : vector<2x32xf32>
    %193 = arith.divf %191, %192 : vector<2x32xf32>
    %194 = arith.mulf %185, %164 : vector<2x32xf32>
    %195 = arith.mulf %179, %187 : vector<2x32xf32>
    %196 = arith.addf %194, %195 : vector<2x32xf32>
    %197 = math.tanh %196 : vector<2x32xf32>
    %198 = arith.mulf %193, %197 : vector<2x32xf32>
    %199 = vector.extract_strided_slice %198 {offsets = [0, 0], sizes = [1, 32], strides = [1, 1]} : vector<2x32xf32> to vector<1x32xf32>
    %c3_106 = arith.constant 3 : index
    %c0_107 = arith.constant 0 : index
    %200 = vector.load %arg12[%c3_106, %c0_107] : memref<16x32xf32, #tpu.memory_space<vmem>>, vector<1x32xf32>
    tpu.vector_store %arg12[%c3_106, %c0_107], %199 {strides = array<i32>} : memref<16x32xf32, #tpu.memory_space<vmem>>, vector<1x32xf32>,
    %201 = vector.extract_strided_slice %198 {offsets = [1, 0], sizes = [1, 32], strides = [1, 1]} : vector<2x32xf32> to vector<1x32xf32>
    %c11_108 = arith.constant 11 : index
    %c0_109 = arith.constant 0 : index
    %202 = vector.load %arg12[%c11_108, %c0_109] : memref<16x32xf32, #tpu.memory_space<vmem>>, vector<1x32xf32>
    tpu.vector_store %arg12[%c11_108, %c0_109], %201 {strides = array<i32>} : memref<16x32xf32, #tpu.memory_space<vmem>>, vector<1x32xf32>,
    %203 = vector.extract_strided_slice %69 {offsets = [8, 0], sizes = [2, 128], strides = [1, 1]} : vector<16x128xf32> to vector<2x128xf32>
    %cst_110 = arith.constant dense<0.000000e+00> : vector<2x128xf32>
    %204 = tpu.matmul %198, %74, %cst_110 {dimension_numbers = #tpu.dot_dimension_numbers<[1], [0], [0], [1], [0, 0, 1, 1], [], []>} : vector<2x32xf32>, vector<32x128xf32>, vector<2x128xf32> -> vector<2x128xf32>
    %205 = arith.addf %203, %204 : vector<2x128xf32>
    %206 = vector.extract_strided_slice %205 {offsets = [0, 0], sizes = [2, 32], strides = [1, 1]} : vector<2x128xf32> to vector<2x32xf32>
    %207 = arith.negf %206 : vector<2x32xf32>
    %208 = math.exp %207 : vector<2x32xf32>
    %cst_111 = arith.constant 1.000000e+00 : f32
    %209 = vector.broadcast %cst_111 : f32 to vector<2x32xf32>
    %210 = arith.addf %209, %208 : vector<2x32xf32>
    %211 = arith.divf %209, %210 : vector<2x32xf32>
    %212 = vector.extract_strided_slice %205 {offsets = [0, 32], sizes = [2, 32], strides = [1, 1]} : vector<2x128xf32> to vector<2x32xf32>
    %213 = arith.negf %212 : vector<2x32xf32>
    %214 = math.exp %213 : vector<2x32xf32>
    %cst_112 = arith.constant 1.000000e+00 : f32
    %215 = vector.broadcast %cst_112 : f32 to vector<2x32xf32>
    %216 = arith.addf %215, %214 : vector<2x32xf32>
    %217 = arith.divf %215, %216 : vector<2x32xf32>
    %218 = vector.extract_strided_slice %205 {offsets = [0, 64], sizes = [2, 32], strides = [1, 1]} : vector<2x128xf32> to vector<2x32xf32>
    %219 = math.tanh %218 : vector<2x32xf32>
    %220 = vector.extract_strided_slice %205 {offsets = [0, 96], sizes = [2, 32], strides = [1, 1]} : vector<2x128xf32> to vector<2x32xf32>
    %221 = arith.negf %220 : vector<2x32xf32>
    %222 = math.exp %221 : vector<2x32xf32>
    %cst_113 = arith.constant 1.000000e+00 : f32
    %223 = vector.broadcast %cst_113 : f32 to vector<2x32xf32>
    %224 = arith.addf %223, %222 : vector<2x32xf32>
    %225 = arith.divf %223, %224 : vector<2x32xf32>
    %226 = arith.mulf %217, %196 : vector<2x32xf32>
    %227 = arith.mulf %211, %219 : vector<2x32xf32>
    %228 = arith.addf %226, %227 : vector<2x32xf32>
    %229 = math.tanh %228 : vector<2x32xf32>
    %230 = arith.mulf %225, %229 : vector<2x32xf32>
    %231 = vector.extract_strided_slice %230 {offsets = [0, 0], sizes = [1, 32], strides = [1, 1]} : vector<2x32xf32> to vector<1x32xf32>
    %c4_114 = arith.constant 4 : index
    %c0_115 = arith.constant 0 : index
    %232 = vector.load %arg12[%c4_114, %c0_115] : memref<16x32xf32, #tpu.memory_space<vmem>>, vector<1x32xf32>
    tpu.vector_store %arg12[%c4_114, %c0_115], %231 {strides = array<i32>} : memref<16x32xf32, #tpu.memory_space<vmem>>, vector<1x32xf32>,
    %233 = vector.extract_strided_slice %230 {offsets = [1, 0], sizes = [1, 32], strides = [1, 1]} : vector<2x32xf32> to vector<1x32xf32>
    %c12_116 = arith.constant 12 : index
    %c0_117 = arith.constant 0 : index
    %234 = vector.load %arg12[%c12_116, %c0_117] : memref<16x32xf32, #tpu.memory_space<vmem>>, vector<1x32xf32>
    tpu.vector_store %arg12[%c12_116, %c0_117], %233 {strides = array<i32>} : memref<16x32xf32, #tpu.memory_space<vmem>>, vector<1x32xf32>,
    %235 = vector.extract_strided_slice %69 {offsets = [10, 0], sizes = [2, 128], strides = [1, 1]} : vector<16x128xf32> to vector<2x128xf32>
    %cst_118 = arith.constant dense<0.000000e+00> : vector<2x128xf32>
    %236 = tpu.matmul %230, %74, %cst_118 {dimension_numbers = #tpu.dot_dimension_numbers<[1], [0], [0], [1], [0, 0, 1, 1], [], []>} : vector<2x32xf32>, vector<32x128xf32>, vector<2x128xf32> -> vector<2x128xf32>
    %237 = arith.addf %235, %236 : vector<2x128xf32>
    %238 = vector.extract_strided_slice %237 {offsets = [0, 0], sizes = [2, 32], strides = [1, 1]} : vector<2x128xf32> to vector<2x32xf32>
    %239 = arith.negf %238 : vector<2x32xf32>
    %240 = math.exp %239 : vector<2x32xf32>
    %cst_119 = arith.constant 1.000000e+00 : f32
    %241 = vector.broadcast %cst_119 : f32 to vector<2x32xf32>
    %242 = arith.addf %241, %240 : vector<2x32xf32>
    %243 = arith.divf %241, %242 : vector<2x32xf32>
    %244 = vector.extract_strided_slice %237 {offsets = [0, 32], sizes = [2, 32], strides = [1, 1]} : vector<2x128xf32> to vector<2x32xf32>
    %245 = arith.negf %244 : vector<2x32xf32>
    %246 = math.exp %245 : vector<2x32xf32>
    %cst_120 = arith.constant 1.000000e+00 : f32
    %247 = vector.broadcast %cst_120 : f32 to vector<2x32xf32>
    %248 = arith.addf %247, %246 : vector<2x32xf32>
    %249 = arith.divf %247, %248 : vector<2x32xf32>
    %250 = vector.extract_strided_slice %237 {offsets = [0, 64], sizes = [2, 32], strides = [1, 1]} : vector<2x128xf32> to vector<2x32xf32>
    %251 = math.tanh %250 : vector<2x32xf32>
    %252 = vector.extract_strided_slice %237 {offsets = [0, 96], sizes = [2, 32], strides = [1, 1]} : vector<2x128xf32> to vector<2x32xf32>
    %253 = arith.negf %252 : vector<2x32xf32>
    %254 = math.exp %253 : vector<2x32xf32>
    %cst_121 = arith.constant 1.000000e+00 : f32
    %255 = vector.broadcast %cst_121 : f32 to vector<2x32xf32>
    %256 = arith.addf %255, %254 : vector<2x32xf32>
    %257 = arith.divf %255, %256 : vector<2x32xf32>
    %258 = arith.mulf %249, %228 : vector<2x32xf32>
    %259 = arith.mulf %243, %251 : vector<2x32xf32>
    %260 = arith.addf %258, %259 : vector<2x32xf32>
    %261 = math.tanh %260 : vector<2x32xf32>
    %262 = arith.mulf %257, %261 : vector<2x32xf32>
    %263 = vector.extract_strided_slice %262 {offsets = [0, 0], sizes = [1, 32], strides = [1, 1]} : vector<2x32xf32> to vector<1x32xf32>
    %c5_122 = arith.constant 5 : index
    %c0_123 = arith.constant 0 : index
    %264 = vector.load %arg12[%c5_122, %c0_123] : memref<16x32xf32, #tpu.memory_space<vmem>>, vector<1x32xf32>
    tpu.vector_store %arg12[%c5_122, %c0_123], %263 {strides = array<i32>} : memref<16x32xf32, #tpu.memory_space<vmem>>, vector<1x32xf32>,
    %265 = vector.extract_strided_slice %262 {offsets = [1, 0], sizes = [1, 32], strides = [1, 1]} : vector<2x32xf32> to vector<1x32xf32>
    %c13_124 = arith.constant 13 : index
    %c0_125 = arith.constant 0 : index
    %266 = vector.load %arg12[%c13_124, %c0_125] : memref<16x32xf32, #tpu.memory_space<vmem>>, vector<1x32xf32>
    tpu.vector_store %arg12[%c13_124, %c0_125], %265 {strides = array<i32>} : memref<16x32xf32, #tpu.memory_space<vmem>>, vector<1x32xf32>,
    %267 = vector.extract_strided_slice %69 {offsets = [12, 0], sizes = [2, 128], strides = [1, 1]} : vector<16x128xf32> to vector<2x128xf32>
    %cst_126 = arith.constant dense<0.000000e+00> : vector<2x128xf32>
    %268 = tpu.matmul %262, %74, %cst_126 {dimension_numbers = #tpu.dot_dimension_numbers<[1], [0], [0], [1], [0, 0, 1, 1], [], []>} : vector<2x32xf32>, vector<32x128xf32>, vector<2x128xf32> -> vector<2x128xf32>
    %269 = arith.addf %267, %268 : vector<2x128xf32>
    %270 = vector.extract_strided_slice %269 {offsets = [0, 0], sizes = [2, 32], strides = [1, 1]} : vector<2x128xf32> to vector<2x32xf32>
    %271 = arith.negf %270 : vector<2x32xf32>
    %272 = math.exp %271 : vector<2x32xf32>
    %cst_127 = arith.constant 1.000000e+00 : f32
    %273 = vector.broadcast %cst_127 : f32 to vector<2x32xf32>
    %274 = arith.addf %273, %272 : vector<2x32xf32>
    %275 = arith.divf %273, %274 : vector<2x32xf32>
    %276 = vector.extract_strided_slice %269 {offsets = [0, 32], sizes = [2, 32], strides = [1, 1]} : vector<2x128xf32> to vector<2x32xf32>
    %277 = arith.negf %276 : vector<2x32xf32>
    %278 = math.exp %277 : vector<2x32xf32>
    %cst_128 = arith.constant 1.000000e+00 : f32
    %279 = vector.broadcast %cst_128 : f32 to vector<2x32xf32>
    %280 = arith.addf %279, %278 : vector<2x32xf32>
    %281 = arith.divf %279, %280 : vector<2x32xf32>
    %282 = vector.extract_strided_slice %269 {offsets = [0, 64], sizes = [2, 32], strides = [1, 1]} : vector<2x128xf32> to vector<2x32xf32>
    %283 = math.tanh %282 : vector<2x32xf32>
    %284 = vector.extract_strided_slice %269 {offsets = [0, 96], sizes = [2, 32], strides = [1, 1]} : vector<2x128xf32> to vector<2x32xf32>
    %285 = arith.negf %284 : vector<2x32xf32>
    %286 = math.exp %285 : vector<2x32xf32>
    %cst_129 = arith.constant 1.000000e+00 : f32
    %287 = vector.broadcast %cst_129 : f32 to vector<2x32xf32>
    %288 = arith.addf %287, %286 : vector<2x32xf32>
    %289 = arith.divf %287, %288 : vector<2x32xf32>
    %290 = arith.mulf %281, %260 : vector<2x32xf32>
    %291 = arith.mulf %275, %283 : vector<2x32xf32>
    %292 = arith.addf %290, %291 : vector<2x32xf32>
    %293 = math.tanh %292 : vector<2x32xf32>
    %294 = arith.mulf %289, %293 : vector<2x32xf32>
    %295 = vector.extract_strided_slice %294 {offsets = [0, 0], sizes = [1, 32], strides = [1, 1]} : vector<2x32xf32> to vector<1x32xf32>
    %c6_130 = arith.constant 6 : index
    %c0_131 = arith.constant 0 : index
    %296 = vector.load %arg12[%c6_130, %c0_131] : memref<16x32xf32, #tpu.memory_space<vmem>>, vector<1x32xf32>
    tpu.vector_store %arg12[%c6_130, %c0_131], %295 {strides = array<i32>} : memref<16x32xf32, #tpu.memory_space<vmem>>, vector<1x32xf32>,
    %297 = vector.extract_strided_slice %294 {offsets = [1, 0], sizes = [1, 32], strides = [1, 1]} : vector<2x32xf32> to vector<1x32xf32>
    %c14_132 = arith.constant 14 : index
    %c0_133 = arith.constant 0 : index
    %298 = vector.load %arg12[%c14_132, %c0_133] : memref<16x32xf32, #tpu.memory_space<vmem>>, vector<1x32xf32>
    tpu.vector_store %arg12[%c14_132, %c0_133], %297 {strides = array<i32>} : memref<16x32xf32, #tpu.memory_space<vmem>>, vector<1x32xf32>,
    %299 = vector.extract_strided_slice %69 {offsets = [14, 0], sizes = [2, 128], strides = [1, 1]} : vector<16x128xf32> to vector<2x128xf32>
    %cst_134 = arith.constant dense<0.000000e+00> : vector<2x128xf32>
    %300 = tpu.matmul %294, %74, %cst_134 {dimension_numbers = #tpu.dot_dimension_numbers<[1], [0], [0], [1], [0, 0, 1, 1], [], []>} : vector<2x32xf32>, vector<32x128xf32>, vector<2x128xf32> -> vector<2x128xf32>
    %301 = arith.addf %299, %300 : vector<2x128xf32>
    %302 = vector.extract_strided_slice %301 {offsets = [0, 0], sizes = [2, 32], strides = [1, 1]} : vector<2x128xf32> to vector<2x32xf32>
    %303 = arith.negf %302 : vector<2x32xf32>
    %304 = math.exp %303 : vector<2x32xf32>
    %cst_135 = arith.constant 1.000000e+00 : f32
    %305 = vector.broadcast %cst_135 : f32 to vector<2x32xf32>
    %306 = arith.addf %305, %304 : vector<2x32xf32>
    %307 = arith.divf %305, %306 : vector<2x32xf32>
    %308 = vector.extract_strided_slice %301 {offsets = [0, 32], sizes = [2, 32], strides = [1, 1]} : vector<2x128xf32> to vector<2x32xf32>
    %309 = arith.negf %308 : vector<2x32xf32>
    %310 = math.exp %309 : vector<2x32xf32>
    %cst_136 = arith.constant 1.000000e+00 : f32
    %311 = vector.broadcast %cst_136 : f32 to vector<2x32xf32>
    %312 = arith.addf %311, %310 : vector<2x32xf32>
    %313 = arith.divf %311, %312 : vector<2x32xf32>
    %314 = vector.extract_strided_slice %301 {offsets = [0, 64], sizes = [2, 32], strides = [1, 1]} : vector<2x128xf32> to vector<2x32xf32>
    %315 = math.tanh %314 : vector<2x32xf32>
    %316 = vector.extract_strided_slice %301 {offsets = [0, 96], sizes = [2, 32], strides = [1, 1]} : vector<2x128xf32> to vector<2x32xf32>
    %317 = arith.negf %316 : vector<2x32xf32>
    %318 = math.exp %317 : vector<2x32xf32>
    %cst_137 = arith.constant 1.000000e+00 : f32
    %319 = vector.broadcast %cst_137 : f32 to vector<2x32xf32>
    %320 = arith.addf %319, %318 : vector<2x32xf32>
    %321 = arith.divf %319, %320 : vector<2x32xf32>
    %322 = arith.mulf %313, %292 : vector<2x32xf32>
    %323 = arith.mulf %307, %315 : vector<2x32xf32>
    %324 = arith.addf %322, %323 : vector<2x32xf32>
    %325 = math.tanh %324 : vector<2x32xf32>
    %326 = arith.mulf %321, %325 : vector<2x32xf32>
    %327 = vector.extract_strided_slice %326 {offsets = [0, 0], sizes = [1, 32], strides = [1, 1]} : vector<2x32xf32> to vector<1x32xf32>
    %c7_138 = arith.constant 7 : index
    %c0_139 = arith.constant 0 : index
    %328 = vector.load %arg12[%c7_138, %c0_139] : memref<16x32xf32, #tpu.memory_space<vmem>>, vector<1x32xf32>
    tpu.vector_store %arg12[%c7_138, %c0_139], %327 {strides = array<i32>} : memref<16x32xf32, #tpu.memory_space<vmem>>, vector<1x32xf32>,
    %329 = vector.extract_strided_slice %326 {offsets = [1, 0], sizes = [1, 32], strides = [1, 1]} : vector<2x32xf32> to vector<1x32xf32>
    %c15_140 = arith.constant 15 : index
    %c0_141 = arith.constant 0 : index
    %330 = vector.load %arg12[%c15_140, %c0_141] : memref<16x32xf32, #tpu.memory_space<vmem>>, vector<1x32xf32>
    tpu.vector_store %arg12[%c15_140, %c0_141], %329 {strides = array<i32>} : memref<16x32xf32, #tpu.memory_space<vmem>>, vector<1x32xf32>,
    %c0_142 = arith.constant 0 : index
    %c0_143 = arith.constant 0 : index
    %331 = vector.load %arg12[%c0_142, %c0_143] : memref<16x32xf32, #tpu.memory_space<vmem>>, vector<16x32xf32>
    %c0_144 = arith.constant 0 : index
    %c0_145 = arith.constant 0 : index
    %332 = vector.load %arg8[%c0_144, %c0_145] : memref<32x128xf32, #tpu.memory_space<vmem>>, vector<32x128xf32>
    %cst_146 = arith.constant dense<0.000000e+00> : vector<16x128xf32>
    %333 = tpu.matmul %331, %332, %cst_146 {dimension_numbers = #tpu.dot_dimension_numbers<[1], [0], [0], [1], [0, 0, 1, 1], [], []>} : vector<16x32xf32>, vector<32x128xf32>, vector<16x128xf32> -> vector<16x128xf32>
    %c0_147 = arith.constant 0 : index
    %c0_148 = arith.constant 0 : index
    %334 = vector.load %arg9[%c0_147, %c0_148] : memref<1x128xf32, #tpu.memory_space<vmem>>, vector<1x128xf32>
    %335 = vector.broadcast %334 : vector<1x128xf32> to vector<16x128xf32>
    %336 = arith.addf %333, %335 : vector<16x128xf32>
    %c0_149 = arith.constant 0 : index
    %c0_150 = arith.constant 0 : index
    %337 = vector.load %arg10[%c0_149, %c0_150] : memref<16x128xf32, #tpu.memory_space<vmem>>, vector<16x128xf32>
    tpu.vector_store %arg10[%c0_149, %c0_150], %336 {strides = array<i32>} : memref<16x128xf32, #tpu.memory_space<vmem>>, vector<16x128xf32>,
    return
  }
  func.func @transform_0(%arg0: i32, %arg1: memref<2x8xi32, #tpu.memory_space<smem>>) -> (i32, i32) {
    %c0_i32 = arith.constant 0 : i32
    %c0_i32_0 = arith.constant 0 : i32
    %c0_i32_1 = arith.constant 0 : i32
    return %c0_i32, %c0_i32_0 : i32, i32
  }
  func.func @transform_1(%arg0: i32, %arg1: memref<2x8xi32, #tpu.memory_space<smem>>) -> (i32, i32, i32) {
    %c0_i32 = arith.constant 0 : i32
    %c0_i32_0 = arith.constant 0 : i32
    %c0_i32_1 = arith.constant 0 : i32
    %c0_i32_2 = arith.constant 0 : i32
    return %c0_i32, %c0_i32_0, %c0_i32_1 : i32, i32, i32
  }
  func.func @transform_2(%arg0: i32, %arg1: memref<2x8xi32, #tpu.memory_space<smem>>) -> (i32, i32, i32) {
    %c0_i32 = arith.constant 0 : i32
    %c0_i32_0 = arith.constant 0 : i32
    %c0_i32_1 = arith.constant 0 : i32
    %c0_i32_2 = arith.constant 0 : i32
    return %c0_i32, %c0_i32_0, %c0_i32_1 : i32, i32, i32
  }
  func.func @transform_3(%arg0: i32, %arg1: memref<2x8xi32, #tpu.memory_space<smem>>) -> (i32, i32) {
    %c0_i32 = arith.constant 0 : i32
    %c0_i32_0 = arith.constant 0 : i32
    %c0_i32_1 = arith.constant 0 : i32
    return %c0_i32, %c0_i32_0 : i32, i32
  }
  func.func @transform_4(%arg0: i32, %arg1: memref<2x8xi32, #tpu.memory_space<smem>>) -> (i32, i32) {
    %c0_i32 = arith.constant 0 : i32
    %c0_i32_0 = arith.constant 0 : i32
    %c0_i32_1 = arith.constant 0 : i32
    return %c0_i32, %c0_i32_0 : i32, i32
  }
  func.func @transform_5(%arg0: i32, %arg1: memref<2x8xi32, #tpu.memory_space<smem>>) -> (i32, i32) {
    %c0_i32 = arith.constant 0 : i32
    %c0_i32_0 = arith.constant 0 : i32
    %c0_i32_1 = arith.constant 0 : i32
    return %c0_i32, %c0_i32_0 : i32, i32
  }
  func.func @transform_6(%arg0: i32, %arg1: memref<2x8xi32, #tpu.memory_space<smem>>) -> (i32, i32) {
    %c0_i32 = arith.constant 0 : i32
    %c0_i32_0 = arith.constant 0 : i32
    %c0_i32_1 = arith.constant 0 : i32
    return %c0_i32, %c0_i32_0 : i32, i32
  }
  func.func @transform_7(%arg0: i32, %arg1: memref<2x8xi32, #tpu.memory_space<smem>>) -> (i32, i32) {
    %c0_i32 = arith.constant 0 : i32
    %c0_i32_0 = arith.constant 0 : i32
    %c0_i32_1 = arith.constant 0 : i32
    return %c0_i32, %c0_i32_0 : i32, i32
  }
  func.func @transform_8(%arg0: i32, %arg1: memref<2x8xi32, #tpu.memory_space<smem>>) -> (i32, i32) {
    %c0_i32 = arith.constant 0 : i32
    %c0_i32_0 = arith.constant 0 : i32
    %c0_i32_1 = arith.constant 0 : i32
    return %c0_i32, %c0_i32_0 : i32, i32
  }
}

</mosaic_0001>

<bundles_post_ra>
// kernel: tpu_custom_call.1
= control target key start
LH: loop header
LB: loop body
LE: loop exit
PB: predicated region body
PF: predicated region fallthrough
CT: control target
= control target key end

     0   :  { %s1008_s12 = smov [#allocation5]   ;;  %s1318_s0 = inlined_call_operand.hbm [shape: s32[2,8], index: 0, kind: input, shape index: {}]   ;;  %s1319_s1 = inlined_call_operand.vmem [shape: f32[64,16], index: 1, kind: input, shape index: {}]   ;;  %s1320_s2 = inlined_call_operand.hbm [shape: f32[1,2,32], index: 2, kind: input, shape index: {}]   ;;  %s1321_s3 = inlined_call_operand.vmem [shape: f32[1,2,32], index: 3, kind: input, shape index: {}]   ;;  %s1322_s4 = inlined_call_operand.vmem [shape: f32[16,128], index: 4, kind: input, shape index: {}]   ;;  %s1323_s5 = inlined_call_operand.vmem [shape: f32[32,128], index: 5, kind: input, shape index: {}]   ;;  %s1324_s6 = inlined_call_operand.vmem [shape: f32[1,128], index: 6, kind: input, shape index: {}]   ;;  %s1325_s7 = inlined_call_operand.vmem [shape: f32[32,128], index: 7, kind: input, shape index: {}]   ;;  %s1326_s8 = inlined_call_operand.vmem [shape: f32[1,128], index: 8, kind: input, shape index: {}]   ;;  %s1327_s9 = inlined_call_operand.hbm [shape: f32[16,128], index: 9, kind: output, shape index: {}]  }
   0x1   :  { %s15_s11 = sshll.u32 %s1318_s0, 4  ;;  %s16_s11 = int_to_ptr.hbm [resolvable:$true] %s15_s11 }
   0x2   :  { %18 = dma.hbm_to_smem %s16_s11, 32, %s1008_s12, [#allocation4] }
   0x3   :  { %1002 = dma.done.wait [#allocation4], 32 }
   0x4   :  { %1003 = vsyncadd [#allocation4], 4294967264 }
   0x5   :  { %21 = sfence }
   0x6   :  { %22 = vsyncpa [#allocation7], 0 }
   0x7   :  { %23 = vsyncpa [#allocation8], 0  ;;  %s31_s15 = sshll.u32 %s1320_s2, 4  ;;  %s1009_s16 = smov [#allocation6]   ;;  %s32_s15 = int_to_ptr.hbm [resolvable:$true] %s31_s15 }
   0x8   :  { %s33_s17 = sshll.u32 %s1009_s16, 4  ;;  %s34_s17 = int_to_ptr.vmem [resolvable:$true] %s33_s17 }
   0x9   :  { %36 = dma.hbm_to_vmem [thread:$0]  %s32_s15, 32, %s34_s17, [#allocation7]  }
   0xa   :  { %1004 = dma.done.wait [#allocation7], 32  }
   0xb   :  { %1005 = vsyncadd [#allocation7], 4294967264  ;;  %s53_s0 = sld [smem:[#allocation5]]  ;;  %vm56_vm0 = vcmask 122880   ;;  %v1080_v0 = vld [vmem:[%s1323_s5 + $0x18] sm:$0xff]  ;;  %v121_v1 = vld [vmem:[%s1322_s4 + $0x8] sm:$0xff] }
   0xc   :  { %s834_s18 = sld [smem:[#allocation5 + $0x80]]  ;;  %v1088_v2 = vld [vmem:[%s1323_s5 + $0x10] sm:$0xff]  ;;  %178 = vmatpush.msra.mxu1 %v1080_v0  ;;  %147 = vmatpush.msra.mxu0 %v121_v1  ;;  %v120_v3 = vld [vmem:[%s1322_s4] sm:$0xff]  ;;  %v1107_v5 = vld [vmem:[%s1323_s5 + $0x8] sm:$0xff]  ;;  %vm162_vm1 = vcmask 261120   ;;  %vm126_vm2 = vcmask 130048  }
   0xd   :  { %s835_s19 = sld [smem:[#allocation5 + $0x1]]  ;;  %250 = vmatpush.msra.mxu3 %v1080_v0  ;;  %481 = vmatpush.msra.mxu2 %v1080_v0  ;;  %v1124_v8 = vld [vmem:[%s1323_s5] sm:$0xff]  ;;  %vm232_vm7 = vcmask 253952   ;;  %vm234_vm8 = vcmask 254977   ;;  %s1013_s13 = smov 128  }
   0xe   :  { %s1071_s20 = sld [smem:[#allocation5 + $0x81]]  ;;  %179 = vmatpush.msra.mxu1 %v1088_v2  ;;  %148 = vmatpush.msra.mxu0 %v120_v3  ;;  %v156_v11 = vld [vmem:[#allocation6] sm:$0x3] }
   0xf   :  { %s1073_s21 = sld [smem:[#allocation5 + $0x2]]  ;;  %251 = vmatpush.msra.mxu3 %v1088_v2  ;;  %482 = vmatpush.msra.mxu2 %v1088_v2  ;;  %v1177_v16 = vld [vmem:[%s1324_s6] ss:$0 sm:$0xff] }
  0x10   :  { %s1075_s22 = sld [smem:[#allocation5 + $0x82]]  ;;  %180 = vmatpush.msra.mxu1 %v1107_v5  ;;  %625 = vmatpush.msrb.mxu0 %v1080_v0  ;;  %v157_v22 = vld [vmem:[%s1321_s3] sm:$0x3] }
  0x11   :  { %s54_s30 = scalar_lea.vmem %s1319_s1, %s53_s0  ;;  %s1093_s10 = sld [smem:[#allocation5 + $0x3]]  ;;  %252 = vmatpush.msra.mxu3 %v1107_v5  ;;  %483 = vmatpush.msra.mxu2 %v1107_v5 }
  0x12   :  { %v55_v4 = vld [vmem:[%s54_s30] sm:$0x1]  ;;  %s59_s15 = scalar_lea.vmem %s1319_s1, %s834_s18  ;;  %s1102_s16 = sld [smem:[#allocation5 + $0x83]]  ;;  %181 = vmatpush.msra.mxu1 %v1124_v8  ;;  %626 = vmatpush.msrb.mxu0 %v1088_v2 }
  0x13   :  { %57 = vst.msk [vmem:[#allocation2] sm:$0x1] %vm56_vm0, %v55_v4  ;;  %v60_v6 = vld [vmem:[%s59_s15] sm:$0x1]  ;;  %s63_s4 = scalar_lea.vmem %s1319_s1, %s835_s19  ;;  %851 = vmatmul.msk.f32.vlgmr.msra.gmra.mxu1 %vm162_vm1, %v156_v11  ;;  %253 = vmatpush.msra.mxu3 %v1124_v8  ;;  %s1011_s0 = smov 32  }
  0x14   :  { %61 = vst.msk [vmem:[#allocation2 + $0x1] sm:$0x1] %vm56_vm0, %v60_v6  ;;  %v64_v7 = vld [vmem:[%s63_s4] sm:$0x1]  ;;  %s67_s25 = scalar_lea.vmem %s1319_s1, %s1071_s20  ;;  %404 = vmatpush.msrb.mxu1 %v1080_v0  ;;  %484 = vmatpush.msra.mxu2 %v1124_v8  ;;  %s841_s3 = sld [smem:[#allocation5 + $0x4]] }
  0x15   :  { %65 = vst.msk [vmem:[#allocation2 + $0x2] sm:$0x1] %vm56_vm0, %v64_v7  ;;  %v68_v9 = vld [vmem:[%s67_s25] sm:$0x1]  ;;  %s71_s29 = scalar_lea.vmem %s1319_s1, %s1073_s21  ;;  %327 = vmatpush.msrb.mxu3 %v1080_v0  ;;  %627 = vmatpush.msrb.mxu0 %v1107_v5  ;;  %s842_s6 = sld [smem:[#allocation5 + $0x84]] }
  0x16   :  { %69 = vst.msk [vmem:[#allocation2 + $0x3] sm:$0x1] %vm56_vm0, %v68_v9  ;;  %v72_v10 = vld [vmem:[%s71_s29] sm:$0x1]  ;;  %s75_s30 = scalar_lea.vmem %s1319_s1, %s1075_s22  ;;  %405 = vmatpush.msrb.mxu1 %v1088_v2  ;;  %s843_s24 = sld [smem:[#allocation5 + $0x5]] }
  0x17   :  { %73 = vst.msk [vmem:[#allocation2 + $0x4] sm:$0x1] %vm56_vm0, %v72_v10  ;;  %v76_v12 = vld [vmem:[%s75_s30] sm:$0x1]  ;;  %s79_s12 = scalar_lea.vmem %s1319_s1, %s1093_s10  ;;  %328 = vmatpush.msrb.mxu3 %v1088_v2  ;;  %628 = vmatpush.msrb.mxu0 %v1124_v8  ;;  %s844_s4 = sld [smem:[#allocation5 + $0x85]] }
  0x18   :  { %77 = vst.msk [vmem:[#allocation2 + $0x5] sm:$0x1] %vm56_vm0, %v76_v12  ;;  %v80_v13 = vld [vmem:[%s79_s12] sm:$0x1]  ;;  %s83_s22 = scalar_lea.vmem %s1319_s1, %s1102_s16  ;;  %406 = vmatpush.msrb.mxu1 %v1107_v5  ;;  %s1010_s16 = smov 64  }
  0x19   :  { %81 = vst.msk [vmem:[#allocation2 + $0x6] sm:$0x1] %vm56_vm0, %v80_v13  ;;  %v84_v14 = vld [vmem:[%s83_s22] sm:$0x1]  ;;  %329 = vmatpush.msrb.mxu3 %v1107_v5  ;;  %s845_s18 = sld [smem:[#allocation5 + $0x6]]  ;;  %s1012_s30 = smov [#allocation9]  }
  0x1a   :  { %85 = vst.msk [vmem:[#allocation2 + $0x7] sm:$0x1] %vm56_vm0, %v84_v14  ;;  %407 = vmatpush.msrb.mxu1 %v1124_v8  ;;  %s846_s2 = sld [smem:[#allocation5 + $0x86]]  ;;  %s87_s28 = scalar_lea.vmem %s1319_s1, %s841_s3 }
  0x1b   :  { %330 = vmatpush.msrb.mxu3 %v1124_v8  ;;  %s847_s25 = sld [smem:[#allocation5 + $0x7]]  ;;  %s91_s20 = scalar_lea.vmem %s1319_s1, %s842_s6 }
  0x1c   :  { %700 = vmatpush.msra.mxu1 %v1080_v0  ;;  %s848_s26 = sld [smem:[#allocation5 + $0x87]]  ;;  %s95_s11 = scalar_lea.vmem %s1319_s1, %s843_s24 }
  0x1d   :  { %s99_s14 = scalar_lea.vmem %s1319_s1, %s844_s4  ;;  %s805_s12 = sshll.u32 %s1327_s9, 4  ;;  %s806_s12 = int_to_ptr.hbm [resolvable:$true] %s805_s12 }
  0x1e   :  { %701 = vmatpush.msra.mxu1 %v1088_v2 }
  0x1f   :  { %s103_s15 = scalar_lea.vmem %s1319_s1, %s845_s18 }
  0x20   :  { %702 = vmatpush.msra.mxu1 %v1107_v5  ;;  %s107_s3 = scalar_lea.vmem %s1319_s1, %s846_s2 }
  0x21   :  { %v118_v15 = vld [vmem:[#allocation2] sm:$0xff]  ;;  %s111_s27 = scalar_lea.vmem %s1319_s1, %s847_s25 }
  0x22   :  { %849 = vmatmul.msk.f32.vlgmr.msra.gmra.mxu0 %vm126_vm2, %v118_v15  ;;  %703 = vmatpush.msra.mxu1 %v1124_v8  ;;  %s115_s18 = scalar_lea.vmem %s1319_s1, %s848_s26 }
  0x90   :  { %v183_v18 = vpop.f32.mrf.mxu1 }
  0x9f   :  { %v150_v17 = vpop.f32.mrf.mxu0 }
  0xa0   :  { %v1180_v19 = vadd.f32 %v1177_v16, %v150_v17 }
  0xa2   :  { %v186_v20 = vadd.f32 %v183_v18, %v1180_v19 }
  0xa4   :  { %878 = vtanh.f32 %v186_v20  ;;  %v852_v23 = vmul.f32 -1.442695, %v186_v20 }
  0xa6   :  { %880 = vpow2.f32 %v852_v23 }
  0xaa   :  { %v879_v21 = vpop.eup %878 }
  0xab   :  { %213 = vrot.lane.b32.xlu0 %v879_v21, %s1010_s16 }
  0xac   :  { %v881_v24 = vpop.eup %880 }
  0xad   :  { %v190_v25 = vadd.f32 1.0, %v881_v24 }
  0xaf   :  { %882 = vrcp.f32 %v190_v25  ;;  %v202_v31 = vand.u32 2147483648, %v190_v25  ;;  %vm196_vm4 = vweird.f32 %v190_v25  ;;  %v200_v32 = vand.u32 2147483647, %v190_v25 }
  0xb1   :  { %v203_v34 = vor.u32 1.1754944e-38, %v202_v31  ;;  %vm201_vm6 = vcmp.eq.f32.partialorder %v200_v32, 8.507059e+37 }
  0xb3   :  { %208 = vrot.lane.b32.xlu0 %v157_v22, %s1011_s0 }
  0xb5   :  { %v883_v26 = vpop.eup %882 }
  0xb6   :  { %v192_v27 = vmul.f32 %v883_v26, %v190_v25  ;;  %vm197_vm3 = vweird.f32 %v883_v26 }
  0xb7   :  { %vm198_vm5 = vmor %vm196_vm4, %vm197_vm3 }
  0xb8   :  { %v193_v28 = vsub.f32 1.0, %v192_v27 }
  0xba   :  { %v194_v29 = vmul.f32 %v883_v26, %v193_v28 }
  0xbc   :  { %v195_v30 = vadd.f32 %v883_v26, %v194_v29 }
  0xbe   :  { %v199_v33 = vsel %vm198_vm5, %v883_v26, %v195_v30 }
  0xbf   :  { %v204_v36 = vsel %vm201_vm6, %v203_v34, %v199_v33 }
 0x11d   :  { %v214_v35 = vpop.permute.xlu0 %213 }
 0x11e   :  { %v216_v37 = vmul.f32 %v214_v35, %v204_v36 }
 0x120   :  { %218 = vrot.lane.b32.xlu1 %v216_v37, %s1011_s0 }
 0x125   :  { %v209_v38 = vpop.permute.xlu0 %208 }
 0x126   :  { %v211_v39 = vmul.f32 %v209_v38, %v204_v36 }
 0x192   :  { %v219_v40 = vpop.permute.xlu1 %218 }
 0x193   :  { %v221_v41 = vadd.f32 %v219_v40, %v211_v39 }
 0x195   :  { %884 = vtanh.f32 %v221_v41  ;;  %v283_v1 = vrot.slane %v221_v41, 6 }
 0x19b   :  { %v885_v42 = vpop.eup %884 }
 0x19c   :  { %224 = vrot.lane.b32.xlu1 %v885_v42, %s1010_s16 }
 0x20e   :  { %v225_v43 = vpop.permute.xlu1 %224 }
 0x20f   :  { %v227_v44 = vmul.f32 %v225_v43, %v204_v36 }
 0x211   :  { %229 = vrot.lane.b32.xlu2 %v227_v44, %s1011_s0 }
 0x26b   :  { %v230_v45 = vpop.permute.xlu2 %229 }
 0x26c   :  { %233 = vst.msk [vmem:[#allocation3] sm:$0x1] %vm232_vm7, %v230_v45  ;;  %853 = vmatmul.msk.f32.vlgmr.msra.gmra.mxu3 %vm162_vm1, %v230_v45 }
 0x26d   :  { %235 = vst.msk [vmem:[#allocation3 + $0x7] sm:$0x2] %vm234_vm8, %v230_v45  ;;  %550 = vmatpush.msra.mxu3 %v1080_v0 }
 0x26f   :  { %551 = vmatpush.msra.mxu3 %v1088_v2 }
 0x271   :  { %552 = vmatpush.msra.mxu3 %v1107_v5 }
 0x273   :  { %553 = vmatpush.msra.mxu3 %v1124_v8 }
 0x2ef   :  { %v255_v46 = vpop.f32.mrf.mxu3 }
 0x2f0   :  { %v259_v47 = vrot.slane %v255_v46, 6 }
 0x2f2   :  { %v261_v48 = vadd.f32 %v259_v47, %v1180_v19 }
 0x2f4   :  { %886 = vtanh.f32 %v261_v48  ;;  %v854_v50 = vmul.f32 -1.442695, %v261_v48 }
 0x2f6   :  { %888 = vpow2.f32 %v854_v50 }
 0x2fa   :  { %v887_v49 = vpop.eup %886 }
 0x2fb   :  { %287 = vrot.lane.b32.xlu2 %v887_v49, %s1010_s16 }
 0x2fc   :  { %v889_v51 = vpop.eup %888 }
 0x2fd   :  { %v265_v52 = vadd.f32 1.0, %v889_v51 }
 0x2ff   :  { %890 = vrcp.f32 %v265_v52  ;;  %v277_v58 = vand.u32 2147483648, %v265_v52  ;;  %vm271_vm10 = vweird.f32 %v265_v52  ;;  %v275_v59 = vand.u32 2147483647, %v265_v52 }
 0x301   :  { %v278_v61 = vor.u32 1.1754944e-38, %v277_v58  ;;  %vm276_vm12 = vcmp.eq.f32.partialorder %v275_v59, 8.507059e+37 }
 0x305   :  { %v891_v53 = vpop.eup %890 }
 0x306   :  { %v267_v54 = vmul.f32 %v891_v53, %v265_v52  ;;  %vm272_vm9 = vweird.f32 %v891_v53 }
 0x307   :  { %vm273_vm11 = vmor %vm271_vm10, %vm272_vm9 }
 0x308   :  { %v268_v55 = vsub.f32 1.0, %v267_v54 }
 0x30a   :  { %v269_v56 = vmul.f32 %v891_v53, %v268_v55 }
 0x30c   :  { %v270_v57 = vadd.f32 %v891_v53, %v269_v56 }
 0x30e   :  { %v274_v60 = vsel %vm273_vm11, %v891_v53, %v270_v57 }
 0x30f   :  { %v279_v63 = vsel %vm276_vm12, %v278_v61, %v274_v60 }
 0x310   :  { %v285_v2 = vmul.f32 %v283_v1, %v279_v63 }
 0x355   :  { %v288_v62 = vpop.permute.xlu2 %287 }
 0x356   :  { %v290_v0 = vmul.f32 %v288_v62, %v279_v63 }
 0x358   :  { %292 = vrot.lane.b32.xlu0 %v290_v0, %s1011_s0 }
 0x3ca   :  { %v293_v3 = vpop.permute.xlu0 %292 }
 0x3cb   :  { %v295_v4 = vadd.f32 %v293_v3, %v285_v2  ;;  %v88_v2 = vld [vmem:[%s87_s28] sm:$0x1] }
 0x3cc   :  { %v92_v3 = vld [vmem:[%s91_s20] sm:$0x1]  ;;  %89 = vst.msk [vmem:[#allocation2 + $0x8] sm:$0x1] %vm56_vm0, %v88_v2 }
 0x3cd   :  { %892 = vtanh.f32 %v295_v4  ;;  %v360_v31 = vrot.slane %v295_v4, 6  ;;  %v96_v4 = vld [vmem:[%s95_s11] sm:$0x1]  ;;  %93 = vst.msk [vmem:[#allocation2 + $0x9] sm:$0x1] %vm56_vm0, %v92_v3 }
 0x3ce   :  { %97 = vst.msk [vmem:[#allocation2 + $0xa] sm:$0x1] %vm56_vm0, %v96_v4 }
 0x3d3   :  { %v893_v5 = vpop.eup %892 }
 0x3d4   :  { %298 = vrot.lane.b32.xlu1 %v893_v5, %s1010_s16  ;;  %v100_v5 = vld [vmem:[%s99_s14] sm:$0x1]  ;;  %s1014_s14 = smov 8  }
 0x3d5   :  { %101 = vst.msk [vmem:[#allocation2 + $0xb] sm:$0x1] %vm56_vm0, %v100_v5 }
 0x446   :  { %v299_v6 = vpop.permute.xlu1 %298 }
 0x447   :  { %v1202_v7 = vmul.f32 %v299_v6, %v279_v63  ;;  %v104_v6 = vld [vmem:[%s103_s15] sm:$0x1] }
 0x448   :  { %105 = vst.msk [vmem:[#allocation2 + $0xc] sm:$0x1] %vm56_vm0, %v104_v6 }
 0x449   :  { %v310_v8 = vrot.slane %v1202_v7, 2 }
 0x44b   :  { %311 = vrot.lane.b32.xlu2 %v310_v8, %s1011_s0  ;;  %v108_v8 = vld [vmem:[%s107_s3] sm:$0x1] }
 0x44c   :  { %109 = vst.msk [vmem:[#allocation2 + $0xd] sm:$0x1] %vm56_vm0, %v108_v8 }
 0x4a5   :  { %v312_v9 = vpop.permute.xlu2 %311 }
 0x4a6   :  { %855 = vmatmul.msk.f32.vlgmr.msrb.gmra.mxu3 %vm162_vm1, %v312_v9  ;;  %v112_v9 = vld [vmem:[%s111_s27] sm:$0x1] }
 0x4a7   :  { %113 = vst.msk [vmem:[#allocation2 + $0xe] sm:$0x1] %vm56_vm0, %v112_v9 }
 0x529   :  { %v332_v10 = vpop.f32.mrf.mxu3 }
 0x52a   :  { %v336_v11 = vrot.slane %v332_v10, 4  ;;  %v116_v10 = vld [vmem:[%s115_s18] sm:$0x1] }
 0x52b   :  { %117 = vst.msk [vmem:[#allocation2 + $0xf] sm:$0x1] %vm56_vm0, %v116_v10 }
 0x52c   :  { %v338_v12 = vadd.f32 %v336_v11, %v1180_v19 }
 0x52e   :  { %894 = vtanh.f32 %v338_v12  ;;  %v856_v14 = vmul.f32 -1.442695, %v338_v12 }
 0x530   :  { %896 = vpow2.f32 %v856_v14 }
 0x532   :  { %v119_v11 = vld [vmem:[#allocation2 + $0x8] sm:$0xff] }
 0x533   :  { %850 = vmatmul.msk.f32.gmra.mxu0 %vm126_vm2, %v119_v11 }
 0x534   :  { %v895_v13 = vpop.eup %894 }
 0x535   :  { %364 = vrot.lane.b32.xlu0 %v895_v13, %s1010_s16 }
 0x536   :  { %v897_v15 = vpop.eup %896 }
 0x537   :  { %v342_v17 = vadd.f32 1.0, %v897_v15 }
 0x539   :  { %898 = vrcp.f32 %v342_v17  ;;  %v354_v24 = vand.u32 2147483648, %v342_v17  ;;  %vm348_vm14 = vweird.f32 %v342_v17  ;;  %v352_v25 = vand.u32 2147483647, %v342_v17 }
 0x53b   :  { %v355_v27 = vor.u32 1.1754944e-38, %v354_v24  ;;  %vm353_vm3 = vcmp.eq.f32.partialorder %v352_v25, 8.507059e+37 }
 0x53f   :  { %v899_v18 = vpop.eup %898 }
 0x540   :  { %v344_v20 = vmul.f32 %v899_v18, %v342_v17  ;;  %vm349_vm13 = vweird.f32 %v899_v18 }
 0x541   :  { %vm350_vm15 = vmor %vm348_vm14, %vm349_vm13 }
 0x542   :  { %v345_v21 = vsub.f32 1.0, %v344_v20 }
 0x544   :  { %v346_v22 = vmul.f32 %v899_v18, %v345_v21 }
 0x546   :  { %v347_v23 = vadd.f32 %v899_v18, %v346_v22 }
 0x548   :  { %v351_v26 = vsel %vm350_vm15, %v899_v18, %v347_v23 }
 0x549   :  { %v356_v29 = vsel %vm353_vm3, %v355_v27, %v351_v26 }
 0x54a   :  { %v362_v32 = vmul.f32 %v360_v31, %v356_v29 }
 0x5a7   :  { %v365_v28 = vpop.permute.xlu0 %364 }
 0x5a8   :  { %v367_v30 = vmul.f32 %v365_v28, %v356_v29 }
 0x5aa   :  { %369 = vrot.lane.b32.xlu1 %v367_v30, %s1011_s0 }
 0x5b0   :  { %v153_v13 = vpop.f32.mrf.mxu0 }
 0x5b1   :  { %v1262_v14 = vadd.f32 %v1177_v16, %v153_v13 }
 0x61c   :  { %v370_v33 = vpop.permute.xlu1 %369 }
 0x61d   :  { %v372_v34 = vadd.f32 %v370_v33, %v362_v32 }
 0x61f   :  { %900 = vtanh.f32 %v372_v34  ;;  %v437_v58 = vrot.slane %v372_v34, 6 }
 0x625   :  { %v901_v35 = vpop.eup %900 }
 0x626   :  { %375 = vrot.lane.b32.xlu2 %v901_v35, %s1010_s16 }
 0x680   :  { %v376_v36 = vpop.permute.xlu2 %375 }
 0x681   :  { %v1211_v37 = vmul.f32 %v376_v36, %v356_v29 }
 0x683   :  { %v387_v38 = vrot.slane %v1211_v37, 4 }
 0x685   :  { %388 = vrot.lane.b32.xlu0 %v387_v38, %s1011_s0 }
 0x6f7   :  { %v389_v39 = vpop.permute.xlu0 %388 }
 0x6f8   :  { %857 = vmatmul.msk.f32.vlgmr.msrb.gmra.mxu1 %vm162_vm1, %v389_v39 }
 0x775   :  { %v409_v40 = vpop.f32.mrf.mxu1 }
 0x776   :  { %v413_v41 = vrot.slane %v409_v40, 2 }
 0x778   :  { %v415_v42 = vadd.f32 %v413_v41, %v1180_v19 }
 0x77a   :  { %902 = vtanh.f32 %v415_v42  ;;  %v858_v44 = vmul.f32 -1.442695, %v415_v42 }
 0x77c   :  { %904 = vpow2.f32 %v858_v44 }
 0x780   :  { %v903_v43 = vpop.eup %902 }
 0x781   :  { %441 = vrot.lane.b32.xlu1 %v903_v43, %s1010_s16 }
 0x782   :  { %v905_v45 = vpop.eup %904 }
 0x783   :  { %v419_v46 = vadd.f32 1.0, %v905_v45 }
 0x785   :  { %906 = vrcp.f32 %v419_v46  ;;  %v431_v52 = vand.u32 2147483648, %v419_v46  ;;  %vm425_vm5 = vweird.f32 %v419_v46  ;;  %v429_v53 = vand.u32 2147483647, %v419_v46 }
 0x787   :  { %v432_v54 = vor.u32 1.1754944e-38, %v431_v52  ;;  %vm430_vm9 = vcmp.eq.f32.partialorder %v429_v53, 8.507059e+37 }
 0x78b   :  { %v907_v47 = vpop.eup %906 }
 0x78c   :  { %v421_v48 = vmul.f32 %v907_v47, %v419_v46  ;;  %vm426_vm4 = vweird.f32 %v907_v47 }
 0x78d   :  { %vm427_vm6 = vmor %vm425_vm5, %vm426_vm4 }
 0x78e   :  { %v422_v49 = vsub.f32 1.0, %v421_v48 }
 0x790   :  { %v423_v50 = vmul.f32 %v907_v47, %v422_v49 }
 0x792   :  { %v424_v51 = vadd.f32 %v907_v47, %v423_v50 }
 0x794   :  { %v428_v19 = vsel %vm427_vm6, %v907_v47, %v424_v51 }
 0x795   :  { %v433_v56 = vsel %vm430_vm9, %v432_v54, %v428_v19 }
 0x796   :  { %v439_v59 = vmul.f32 %v437_v58, %v433_v56 }
 0x7f3   :  { %v442_v55 = vpop.permute.xlu1 %441 }
 0x7f4   :  { %v444_v57 = vmul.f32 %v442_v55, %v433_v56 }
 0x7f6   :  { %446 = vrot.lane.b32.xlu2 %v444_v57, %s1011_s0 }
 0x850   :  { %v447_v60 = vpop.permute.xlu2 %446 }
 0x851   :  { %v1219_v61 = vadd.f32 %v447_v60, %v439_v59 }
 0x853   :  { %908 = vtanh.f32 %v1219_v61  ;;  %v511_v34 = vrot.slane %v1219_v61, 6 }
 0x859   :  { %v909_v62 = vpop.eup %908 }
 0x85a   :  { %452 = vrot.lane.b32.xlu0 %v909_v62, %s1010_s16 }
 0x8cc   :  { %v453_v63 = vpop.permute.xlu0 %452 }
 0x8cd   :  { %v1223_v0 = vmul.f32 %v453_v63, %v433_v56 }
 0x8cf   :  { %v464_v1 = vrot.slane %v1223_v0, 6 }
 0x8d1   :  { %465 = vrot.lane.b32.xlu1 %v464_v1, %s1011_s0 }
 0x943   :  { %v466_v12 = vpop.permute.xlu1 %465 }
 0x944   :  { %859 = vmatmul.msk.f32.vlgmr.msra.gmra.mxu2 %vm162_vm1, %v466_v12 }
 0x9c7   :  { %v486_v15 = vpop.f32.mrf.mxu2 }
 0x9c8   :  { %v489_v17 = vadd.f32 %v486_v15, %v1262_v14 }
 0x9ca   :  { %910 = vtanh.f32 %v489_v17  ;;  %v860_v20 = vmul.f32 -1.442695, %v489_v17 }
 0x9cc   :  { %912 = vpow2.f32 %v860_v20 }
 0x9d0   :  { %v911_v18 = vpop.eup %910 }
 0x9d1   :  { %515 = vrot.lane.b32.xlu2 %v911_v18, %s1010_s16 }
 0x9d2   :  { %v913_v21 = vpop.eup %912 }
 0x9d3   :  { %v493_v22 = vadd.f32 1.0, %v913_v21 }
 0x9d5   :  { %914 = vrcp.f32 %v493_v22  ;;  %v505_v16 = vand.u32 2147483648, %v493_v22  ;;  %vm499_vm2 = vweird.f32 %v493_v22  ;;  %v503_v28 = vand.u32 2147483647, %v493_v22 }
 0x9d7   :  { %v506_v30 = vor.u32 1.1754944e-38, %v505_v16  ;;  %vm504_vm11 = vcmp.eq.f32.partialorder %v503_v28, 8.507059e+37 }
 0x9db   :  { %v915_v23 = vpop.eup %914 }
 0x9dc   :  { %v495_v24 = vmul.f32 %v915_v23, %v493_v22  ;;  %vm500_vm0 = vweird.f32 %v915_v23 }
 0x9dd   :  { %vm501_vm10 = vmor %vm499_vm2, %vm500_vm0  ;;  %vm306_vm2 = vcmask 256002  }
 0x9de   :  { %v496_v25 = vsub.f32 1.0, %v495_v24 }
 0x9e0   :  { %v497_v26 = vmul.f32 %v915_v23, %v496_v25 }
 0x9e2   :  { %v498_v27 = vadd.f32 %v915_v23, %v497_v26 }
 0x9e4   :  { %v502_v29 = vsel %vm501_vm10, %v915_v23, %v498_v27  ;;  %vm308_vm10 = vcmask 257027  }
 0x9e5   :  { %v507_v32 = vsel %vm504_vm11, %v506_v30, %v502_v29  ;;  %vm383_vm11 = vcmask 258052  }
 0x9e6   :  { %v513_v35 = vmul.f32 %v511_v34, %v507_v32 }
 0xa2b   :  { %v516_v31 = vpop.permute.xlu2 %515 }
 0xa2c   :  { %v518_v33 = vmul.f32 %v516_v31, %v507_v32 }
 0xa2e   :  { %520 = vrot.lane.b32.xlu0 %v518_v33, %s1011_s0 }
 0xaa0   :  { %v521_v36 = vpop.permute.xlu0 %520 }
 0xaa1   :  { %v523_v38 = vadd.f32 %v521_v36, %v513_v35 }
 0xaa3   :  { %916 = vtanh.f32 %v523_v38  ;;  %v583_v61 = vrot.slane %v523_v38, 6 }
 0xaa9   :  { %v917_v39 = vpop.eup %916 }
 0xaaa   :  { %526 = vrot.lane.b32.xlu1 %v917_v39, %s1010_s16 }
 0xb1c   :  { %v527_v40 = vpop.permute.xlu1 %526 }
 0xb1d   :  { %v529_v41 = vmul.f32 %v527_v40, %v507_v32 }
 0xb1f   :  { %531 = vrot.lane.b32.xlu2 %v529_v41, %s1011_s0 }
 0xb79   :  { %v532_v42 = vpop.permute.xlu2 %531 }
 0xb7a   :  { %534 = vst.msk [vmem:[#allocation3 + $0x4] sm:$0x1] %vm232_vm7, %v532_v42  ;;  %861 = vmatmul.msk.f32.vlgmr.msra.gmra.mxu3 %vm162_vm1, %v532_v42 }
 0xb7b   :  { %535 = vst.msk [vmem:[#allocation3 + $0xb] sm:$0x2] %vm234_vm8, %v532_v42 }
 0xbfd   :  { %v555_v43 = vpop.f32.mrf.mxu3 }
 0xbfe   :  { %v559_v44 = vrot.slane %v555_v43, 6 }
 0xc00   :  { %v561_v45 = vadd.f32 %v559_v44, %v1262_v14 }
 0xc02   :  { %918 = vtanh.f32 %v561_v45  ;;  %v862_v47 = vmul.f32 -1.442695, %v561_v45 }
 0xc04   :  { %920 = vpow2.f32 %v862_v47 }
 0xc08   :  { %v919_v46 = vpop.eup %918 }
 0xc09   :  { %587 = vrot.lane.b32.xlu0 %v919_v46, %s1010_s16 }
 0xc0a   :  { %v921_v48 = vpop.eup %920 }
 0xc0b   :  { %v565_v49 = vadd.f32 1.0, %v921_v48 }
 0xc0d   :  { %922 = vrcp.f32 %v565_v49  ;;  %v577_v54 = vand.u32 2147483648, %v565_v49  ;;  %vm571_vm8 = vweird.f32 %v565_v49  ;;  %v575_v55 = vand.u32 2147483647, %v565_v49 }
 0xc0f   :  { %v578_v57 = vor.u32 1.1754944e-38, %v577_v54  ;;  %vm576_vm13 = vcmp.eq.f32.partialorder %v575_v55, 8.507059e+37 }
 0xc13   :  { %v923_v50 = vpop.eup %922 }
 0xc14   :  { %v567_v51 = vmul.f32 %v923_v50, %v565_v49  ;;  %vm572_vm7 = vweird.f32 %v923_v50 }
 0xc15   :  { %vm573_vm12 = vmor %vm571_vm8, %vm572_vm7  ;;  %vm385_vm7 = vcmask 259077   ;;  %vm460_vm8 = vcmask 260102  }
 0xc16   :  { %v568_v52 = vsub.f32 1.0, %v567_v51 }
 0xc18   :  { %v569_v53 = vmul.f32 %v923_v50, %v568_v52 }
 0xc1a   :  { %v570_v19 = vadd.f32 %v923_v50, %v569_v53 }
 0xc1c   :  { %v574_v56 = vsel %vm573_vm12, %v923_v50, %v570_v19  ;;  %vm462_vm12 = vcmask 261127  }
 0xc1d   :  { %v579_v59 = vsel %vm576_vm13, %v578_v57, %v574_v56 }
 0xc1e   :  { %v585_v62 = vmul.f32 %v583_v61, %v579_v59 }
 0xc7b   :  { %v588_v58 = vpop.permute.xlu0 %587 }
 0xc7c   :  { %v590_v60 = vmul.f32 %v588_v58, %v579_v59 }
 0xc7e   :  { %592 = vrot.lane.b32.xlu1 %v590_v60, %s1011_s0 }
 0xcf0   :  { %v593_v63 = vpop.permute.xlu1 %592 }
 0xcf1   :  { %v595_v1 = vadd.f32 %v593_v63, %v585_v62 }
 0xcf3   :  { %924 = vtanh.f32 %v595_v1  ;;  %v658_v29 = vrot.slane %v595_v1, 6 }
 0xcf9   :  { %v925_v2 = vpop.eup %924 }
 0xcfa   :  { %598 = vrot.lane.b32.xlu2 %v925_v2, %s1010_s16 }
 0xd54   :  { %v599_v3 = vpop.permute.xlu2 %598 }
 0xd55   :  { %v601_v4 = vmul.f32 %v599_v3, %v579_v59  ;;  %v763_v3 = vld [vmem:[%s1325_s7 + $0x18] sm:$0xff] }
 0xd56   :  { %786 = vmatpush.msrb.mxu2 %v763_v3 }
 0xd57   :  { %v608_v5 = vrot.slane %v601_v4, 2 }
 0xd59   :  { %609 = vrot.lane.b32.xlu0 %v608_v5, %s1011_s0  ;;  %v760_v5 = vld [vmem:[%s1325_s7] sm:$0xff] }
 0xdcb   :  { %v610_v6 = vpop.permute.xlu0 %609 }
 0xdcc   :  { %863 = vmatmul.msk.f32.vlgmr.msrb.gmra.mxu0 %vm162_vm1, %v610_v6 }
 0xe49   :  { %v630_v8 = vpop.f32.mrf.mxu0 }
 0xe4a   :  { %v634_v9 = vrot.slane %v630_v8, 4 }
 0xe4c   :  { %v636_v10 = vadd.f32 %v634_v9, %v1262_v14 }
 0xe4e   :  { %926 = vtanh.f32 %v636_v10  ;;  %v864_v12 = vmul.f32 -1.442695, %v636_v10  ;;  %v877_v10 = vld [vmem:[%s1326_s8] ss:$0 sm:$0xff] }
 0xe50   :  { %928 = vpow2.f32 %v864_v12 }
 0xe54   :  { %v927_v11 = vpop.eup %926 }
 0xe55   :  { %662 = vrot.lane.b32.xlu1 %v927_v11, %s1010_s16 }
 0xe56   :  { %v929_v13 = vpop.eup %928 }
 0xe57   :  { %v640_v15 = vadd.f32 1.0, %v929_v13 }
 0xe59   :  { %930 = vrcp.f32 %v640_v15  ;;  %v652_v23 = vand.u32 2147483648, %v640_v15  ;;  %vm646_vm15 = vweird.f32 %v640_v15  ;;  %v650_v24 = vand.u32 2147483647, %v640_v15 }
 0xe5b   :  { %v653_v26 = vor.u32 1.1754944e-38, %v652_v23  ;;  %vm651_vm4 = vcmp.eq.f32.partialorder %v650_v24, 8.507059e+37 }
 0xe5f   :  { %v931_v17 = vpop.eup %930 }
 0xe60   :  { %v642_v18 = vmul.f32 %v931_v17, %v640_v15  ;;  %vm647_vm14 = vweird.f32 %v931_v17 }
 0xe61   :  { %vm648_vm3 = vmor %vm646_vm15, %vm647_vm14 }
 0xe62   :  { %v643_v20 = vsub.f32 1.0, %v642_v18 }
 0xe64   :  { %v644_v21 = vmul.f32 %v931_v17, %v643_v20 }
 0xe66   :  { %v645_v22 = vadd.f32 %v931_v17, %v644_v21 }
 0xe68   :  { %v649_v25 = vsel %vm648_vm3, %v931_v17, %v645_v22 }
 0xe69   :  { %v654_v16 = vsel %vm651_vm4, %v653_v26, %v649_v25 }
 0xe6a   :  { %v660_v30 = vmul.f32 %v658_v29, %v654_v16 }
 0xec7   :  { %v663_v27 = vpop.permute.xlu1 %662 }
 0xec8   :  { %v665_v28 = vmul.f32 %v663_v27, %v654_v16 }
 0xeca   :  { %667 = vrot.lane.b32.xlu2 %v665_v28, %s1011_s0 }
 0xf24   :  { %v668_v31 = vpop.permute.xlu2 %667 }
 0xf25   :  { %v670_v32 = vadd.f32 %v668_v31, %v660_v30 }
 0xf27   :  { %932 = vtanh.f32 %v670_v32  ;;  %v733_v57 = vrot.slane %v670_v32, 6 }
 0xf2d   :  { %v933_v33 = vpop.eup %932 }
 0xf2e   :  { %673 = vrot.lane.b32.xlu0 %v933_v33, %s1010_s16 }
 0xfa0   :  { %v674_v34 = vpop.permute.xlu0 %673 }
 0xfa1   :  { %v676_v35 = vmul.f32 %v674_v34, %v654_v16 }
 0xfa3   :  { %v683_v36 = vrot.slane %v676_v35, 4 }
 0xfa5   :  { %684 = vrot.lane.b32.xlu1 %v683_v36, %s1011_s0 }
0x1017   :  { %v685_v38 = vpop.permute.xlu1 %684 }
0x1018   :  { %865 = vmatmul.msk.f32.vlgmr.msra.gmra.mxu1 %vm162_vm1, %v685_v38 }
0x1095   :  { %v705_v39 = vpop.f32.mrf.mxu1 }
0x1096   :  { %v709_v40 = vrot.slane %v705_v39, 2 }
0x1098   :  { %v711_v41 = vadd.f32 %v709_v40, %v1262_v14 }
0x109a   :  { %934 = vtanh.f32 %v711_v41  ;;  %v866_v43 = vmul.f32 -1.442695, %v711_v41 }
0x109c   :  { %936 = vpow2.f32 %v866_v43 }
0x10a0   :  { %v935_v42 = vpop.eup %934 }
0x10a1   :  { %737 = vrot.lane.b32.xlu2 %v935_v42, %s1010_s16 }
0x10a2   :  { %v937_v44 = vpop.eup %936 }
0x10a3   :  { %v715_v45 = vadd.f32 1.0, %v937_v44 }
0x10a5   :  { %938 = vrcp.f32 %v715_v45  ;;  %v727_v14 = vand.u32 2147483648, %v715_v45  ;;  %vm721_vm6 = vweird.f32 %v715_v45  ;;  %v725_v51 = vand.u32 2147483647, %v715_v45 }
0x10a7   :  { %v728_v53 = vor.u32 1.1754944e-38, %v727_v14  ;;  %vm726_vm0 = vcmp.eq.f32.partialorder %v725_v51, 8.507059e+37 }
0x10a9   :  { %303 = vrot.lane.b32.xlu2 %v1202_v7, %s1011_s0 }
0x10ab   :  { %v939_v46 = vpop.eup %938 }
0x10ac   :  { %v717_v47 = vmul.f32 %v939_v46, %v715_v45  ;;  %vm722_vm5 = vweird.f32 %v939_v46 }
0x10ad   :  { %vm723_vm9 = vmor %vm721_vm6, %vm722_vm5 }
0x10ae   :  { %v718_v48 = vsub.f32 1.0, %v717_v47 }
0x10b0   :  { %v719_v49 = vmul.f32 %v939_v46, %v718_v48 }
0x10b1   :  { %603 = vrot.lane.b32.xlu2 %v601_v4, %s1011_s0  ;;  %v762_v4 = vld [vmem:[%s1325_s7 + $0x10] sm:$0xff] }
0x10b2   :  { %v720_v50 = vadd.f32 %v939_v46, %v719_v49  ;;  %787 = vmatpush.msrb.mxu2 %v762_v4 }
0x10b4   :  { %v724_v52 = vsel %vm723_vm9, %v939_v46, %v720_v50 }
0x10b5   :  { %v729_v19 = vsel %vm726_vm0, %v728_v53, %v724_v52 }
0x10b6   :  { %v735_v58 = vmul.f32 %v733_v57, %v729_v19 }
0x10fb   :  { %v738_v7 = vpop.permute.xlu2 %737 }
0x10fc   :  { %v740_v54 = vmul.f32 %v738_v7, %v729_v19 }
0x10fe   :  { %742 = vrot.lane.b32.xlu0 %v740_v54, %s1011_s0 }
0x1103   :  { %v304_v55 = vpop.permute.xlu2 %303 }
0x1104   :  { %307 = vst.msk [vmem:[#allocation3 - $0x1] sm:$0x4] %vm306_vm2, %v304_v55 }
0x1105   :  { %309 = vst.msk [vmem:[#allocation3 + $0x6] sm:$0x8] %vm308_vm10, %v304_v55 }
0x1106   :  { %380 = vrot.lane.b32.xlu0 %v1211_v37, %s1011_s0 }
0x110b   :  { %v604_v56 = vpop.permute.xlu2 %603 }
0x110c   :  { %606 = vst.msk [vmem:[#allocation3 + $0x3] sm:$0x4] %vm306_vm2, %v604_v56 }
0x110d   :  { %607 = vst.msk [vmem:[#allocation3 + $0xa] sm:$0x8] %vm308_vm10, %v604_v56 }
0x110e   :  { %678 = vrot.lane.b32.xlu0 %v676_v35, %s1011_s0 }
0x1170   :  { %v743_v59 = vpop.permute.xlu0 %742 }
0x1171   :  { %v745_v60 = vadd.f32 %v743_v59, %v735_v58 }
0x1173   :  { %940 = vtanh.f32 %v745_v60 }
0x1178   :  { %v381_v61 = vpop.permute.xlu0 %380 }
0x1179   :  { %v941_v62 = vpop.eup %940  ;;  %384 = vst.msk [vmem:[#allocation3 - $0x2] sm:$0x10] %vm383_vm11, %v381_v61 }
0x117a   :  { %386 = vst.msk [vmem:[#allocation3 + $0x5] sm:$0x20] %vm385_vm7, %v381_v61  ;;  %748 = vrot.lane.b32.xlu1 %v941_v62, %s1010_s16 }
0x1180   :  { %v679_v63 = vpop.permute.xlu0 %678 }
0x1181   :  { %681 = vst.msk [vmem:[#allocation3 + $0x2] sm:$0x10] %vm383_vm11, %v679_v63 }
0x1182   :  { %682 = vst.msk [vmem:[#allocation3 + $0x9] sm:$0x20] %vm385_vm7, %v679_v63  ;;  %457 = vrot.lane.b32.xlu1 %v1223_v0, %s1011_s0  ;;  %v761_v0 = vld [vmem:[%s1325_s7 + $0x8] sm:$0xff]  ;;  %s803_s7 = sshll.u32 %s1012_s30, 4  ;;  %s804_s7 = int_to_ptr.vmem [resolvable:$true] %s803_s7 }
0x1183   :  { %788 = vmatpush.msrb.mxu2 %v761_v0 }
0x1185   :  { %789 = vmatpush.msrb.mxu2 %v760_v5 }
0x11ec   :  { %v749_v37 = vpop.permute.xlu1 %748 }
0x11ed   :  { %v751_v1 = vmul.f32 %v749_v37, %v729_v19 }
0x11ef   :  { %753 = vrot.lane.b32.xlu1 %v751_v1, %s1011_s0 }
0x11f4   :  { %v458_v2 = vpop.permute.xlu1 %457 }
0x11f5   :  { %461 = vst.msk [vmem:[#allocation3 - $0x3] sm:$0x40] %vm460_vm8, %v458_v2 }
0x11f6   :  { %463 = vst.msk [vmem:[#allocation3 + $0x4] sm:$0x80] %vm462_vm12, %v458_v2 }
0x1261   :  { %v754_v6 = vpop.permute.xlu1 %753 }
0x1262   :  { %756 = vst.msk [vmem:[#allocation3 + $0x1] sm:$0x40] %vm460_vm8, %v754_v6 }
0x1263   :  { %757 = vst.msk [vmem:[#allocation3 + $0x8] sm:$0x80] %vm462_vm12, %v754_v6 }
0x1269   :  { %v758_v8 = vld [vmem:[#allocation3] sm:$0xff] }
0x126a   :  { %867 = vmatmul.msk.f32.vlgmr.msrb.gmra.mxu2 %vm162_vm1, %v758_v8  ;;  %v759_v9 = vld [vmem:[#allocation3 + $0x8] sm:$0xff] }
0x1272   :  { %868 = vmatmul.msk.f32.gmra.mxu2 %vm162_vm1, %v759_v9 }
0x12ed   :  { %v791_v11 = vpop.f32.mrf.mxu2 }
0x12ee   :  { %v792_v12 = vadd.f32 %v877_v10, %v791_v11 }
0x12f0   :  { %797 = vst [vmem:[#allocation9] sm:$0xff] %v792_v12 }
0x12f5   :  { %v794_v13 = vpop.f32.mrf.mxu2 }
0x12f6   :  { %v795_v15 = vadd.f32 %v877_v10, %v794_v13 }
0x12f8   :  { %798 = vst [vmem:[#allocation9 + $0x8] sm:$0xff] %v795_v15 }
0x12f9   :  { %811 = dma.vmem_to_hbm [thread:$0]  %s804_s7, 256, %s806_s12, [#allocation8], %s1013_s13, %s1013_s13, %s1014_s14  }
0x12fa   :  { %1006 = dma.done.wait [#allocation8], 256  }
0x12fb   :  { %1007 = vsyncadd [#allocation8], 4294967040 }
0x12fc   :  { %816 = vsyncpa [#allocation7], 1 }
0x12fd   :  { %817 = vsyncpa [#allocation8], 1 }

</bundles_post_ra>
